<compile_context>
chip_gen: v7x
topology: tpu7x:2x2x1
jax: 0.10.0
libtpu: 0.0.40
codegen_flags: <defaults>
</compile_context>

<pallas_src>
import functools

import jax
import jax.numpy as jnp
from jax import lax
from jax.experimental import pallas as pl
from jax.experimental.pallas import tpu as pltpu

LANE = 128


def _round_up(n, m):
    return (n + m - 1) // m * m


# ----------------------------------------------------------------------------
# Pallas kernel: one frame per grid step.
#   out = [relu]( sum_t xf[tap_t : tap_t + Mg] @ w[t]   # 3x3 conv, BN scale folded
#                 [+ xd @ wd]                            # fused 1x1 downsample+BN
#                 + shift                                # folded BN shift(s)
#                 [+ residual] )                         # identity residual
# Matmuls run in bf16 on the MXU, everything else in f32.
# ----------------------------------------------------------------------------
def _conv_bn_kernel(*refs, tap_offsets, apply_relu, res_mode):
    xf_ref, w_ref, shift_ref = refs[0], refs[1], refs[2]
    o_ref = refs[-1]
    mg, coutp = o_ref.shape

    acc = jnp.zeros((mg, coutp), jnp.float32)
    for t, off in enumerate(tap_offsets):            # static unroll: 9 taps (K = Cin each)
        acc += jnp.dot(xf_ref[pl.ds(off, mg), :], w_ref[t],
                       preferred_element_type=jnp.float32)
    if res_mode == "matmul":                         # fused 1x1 downsample conv (+BN scale)
        acc += jnp.dot(refs[3][...], refs[4][...],
                       preferred_element_type=jnp.float32)
    acc += shift_ref[...].astype(jnp.float32)        # BN shift (conv2 + downsample combined)
    if res_mode == "add":                            # identity residual
        acc += refs[3][...].astype(jnp.float32)
    if apply_relu:
        acc = jnp.maximum(acc, 0.0)
    o_ref[...] = acc.astype(o_ref.dtype)


def fused_conv_bn(xf, tap_offsets, w_taps, shift, mg, *, residual=None,
                  down=None, apply_relu=True, out_dtype=jnp.bfloat16):
    """xf: (B, Ltot, Cin) bf16 flattened padded frames.  w_taps: (T, Cin, Coutp) bf16
    with BN scale folded.  shift: (1, Coutp) f32.  residual: (B, mg, Coutp) bf16 or None.
    down: (xd (B, mg, Cd) bf16, wd (Cd, Coutp) bf16) or None.  Returns (B, mg, Coutp)."""
    B, ltot, cin = xf.shape
    n_taps, _, coutp = w_taps.shape

    in_specs = [
        pl.BlockSpec((None, ltot, cin), lambda b: (b, 0, 0)),      # per-frame input
        pl.BlockSpec((n_taps, cin, coutp), lambda b: (0, 0, 0)),   # grid-invariant weights
        pl.BlockSpec((1, coutp), lambda b: (0, 0)),                # grid-invariant shift
    ]
    args = [xf, w_taps, shift]
    blk_bytes = ltot * cin * 2 + n_taps * cin * coutp * 2 + coutp * 4

    res_mode = "none"
    if residual is not None:
        res_mode = "add"
        in_specs.append(pl.BlockSpec((None, mg, coutp), lambda b: (b, 0, 0)))
        args.append(residual)
        blk_bytes += mg * coutp * 2
    elif down is not None:
        res_mode = "matmul"
        xd, wd = down
        cd = xd.shape[-1]
        in_specs.append(pl.BlockSpec((None, mg, cd), lambda b: (b, 0, 0)))
        in_specs.append(pl.BlockSpec((cd, coutp), lambda b: (0, 0)))
        args += [xd, wd]
        blk_bytes += mg * cd * 2 + cd * coutp * 2

    out_bytes = mg * coutp * jnp.dtype(out_dtype).itemsize
    # double-buffered blocks + f32 accumulator + slack; clamp so it is safe on
    # v5e/v6e (128 MiB physical VMEM) and v7x (64 MiB).
    vmem_limit = int(min(48 << 20,
                         max(32 << 20,
                             2 * (blk_bytes + out_bytes) + 4 * mg * coutp + (2 << 20))))

    kernel = functools.partial(
        _conv_bn_kernel,
        tap_offsets=tuple(int(t) for t in tap_offsets),
        apply_relu=apply_relu, res_mode=res_mode)

    return pl.pallas_call(
        kernel,
        out_shape=jax.ShapeDtypeStruct((B, mg, coutp), out_dtype),
        grid=(B,),
        in_specs=in_specs,
        out_specs=pl.BlockSpec((None, mg, coutp), lambda b: (b, 0, 0)),
        compiler_params=pltpu.CompilerParams(
            dimension_semantics=("parallel",),     # frames split across TCs (v7x megacore)
            vmem_limit_bytes=vmem_limit,
        ),
    )(*args)


# ----------------------------------------------------------------------------
# Wrapper-side layout helpers (cheap strided copies / pads only -- no 9x blowup)
# ----------------------------------------------------------------------------
def build_tap_layout(x_bhwc, stride):
    """Flatten padded frames so every 3x3 tap becomes a contiguous row window.

    Returns (xf (B, Ltot, C), tap_offsets[9], Ho, Wo, Wg, Mg) where the kernel's
    output rows index an (Ho, Wg) grid whose columns >= Wo are garbage (sliced off)."""
    B, H, W, C = x_bhwc.shape
    if stride == 1:
        xp = jnp.pad(x_bhwc, ((0, 0), (1, 3), (1, 1), (0, 0)))   # extra bottom rows = slack
        Hp, Wp = H + 4, W + 2
        Ho, Wo, Wg = H, W, Wp
        xf = xp.reshape(B, Hp * Wp, C)
        taps = [dh * Wg + dw for dh in range(3) for dw in range(3)]
    elif stride == 2:
        assert H % 2 == 0 and W % 2 == 0, "stride-2 block expects even spatial dims"
        xp = jnp.pad(x_bhwc, ((0, 0), (1, 3), (1, 1), (0, 0)))
        Hp, Wp = H + 4, W + 2
        Ho, Wo = H // 2, W // 2
        Hpp, Wpp = Hp // 2, Wp // 2                 # per-phase rows/cols (Ho+2, Wo+1)
        Wg = Wpp
        # 2x2 space-to-depth phases: tap (dh, dw) becomes a stride-1 window of
        # phase (dh%2, dw%2) at offset (dh//2, dw//2).
        phases = [xp[:, pi::2, pj::2, :] for pi in range(2) for pj in range(2)]
        lp = Hpp * Wpp
        xf = jnp.stack(phases, axis=1).reshape(B, 4 * lp, C)
        taps = []
        for dh in range(3):
            for dw in range(3):
                p = (dh % 2) * 2 + (dw % 2)
                taps.append(p * lp + (dh // 2) * Wpp + (dw // 2))
    else:
        raise NotImplementedError("only stride 1 and 2 are supported")
    return xf, taps, Ho, Wo, Wg, Ho * Wg


def fold_bn(bn):
    gamma, beta, mean, var, eps = bn
    scale = gamma / jnp.sqrt(var + eps)
    shift = beta - mean * scale
    return scale, shift


def prep_w3x3(w_oihw, scale, coutp):
    """(Cout, Cin, 3, 3) -> (9, Cin, Coutp) bf16 with BN scale folded, Cout zero-padded."""
    cout, cin = w_oihw.shape[0], w_oihw.shape[1]
    w = jnp.transpose(w_oihw, (2, 3, 1, 0)).reshape(9, cin, cout)
    w = w * scale[None, None, :]
    w = jnp.pad(w, ((0, 0), (0, 0), (0, coutp - cout)))
    return w.astype(jnp.bfloat16)


def prep_w1x1(w_oihw, scale, coutp):
    """(Cout, Cin, 1, 1) -> (Cin, Coutp) bf16 with BN scale folded, Cout zero-padded."""
    cout, cin = w_oihw.shape[0], w_oihw.shape[1]
    w = w_oihw.reshape(cout, cin).T * scale[None, :]
    w = jnp.pad(w, ((0, 0), (0, coutp - cout)))
    return w.astype(jnp.bfloat16)


def _pad_row(v, coutp):
    return jnp.pad(v, (0, coutp - v.shape[0])).reshape(1, coutp).astype(jnp.float32)


# ----------------------------------------------------------------------------
# Basicblock3d forward
# ----------------------------------------------------------------------------
def basicblock3d_forward(x_ncthw, params, stride, has_downsample):
    N, C, T, H, W = x_ncthw.shape
    planes = params["conv1_w"].shape[0]
    coutp = _round_up(planes, LANE)
    B = N * T

    x = jnp.transpose(x_ncthw, (0, 2, 3, 4, 1)).reshape(B, H, W, C)
    x_bf = x.astype(jnp.bfloat16)

    s1, b1 = fold_bn(params["bn1"])
    s2, b2 = fold_bn(params["bn2"])
    w1 = prep_w3x3(params["conv1_w"], s1, coutp)
    w2 = prep_w3x3(params["conv2_w"], s2, coutp)
    shift1 = _pad_row(b1, coutp)
    shift2 = _pad_row(b2, coutp)

    # ---- conv1 (3x3, stride s) -> bn1 -> relu : one fused kernel ----
    xf1, taps1, Ho, Wo, Wg1, Mg1 = build_tap_layout(x_bf, stride)
    out1 = fused_conv_bn(xf1, taps1, w1, shift1, Mg1,
                         apply_relu=True, out_dtype=jnp.bfloat16)
    out1 = out1.reshape(B, Ho, Wg1, coutp)[:, :, :Wo, :planes]   # bf16 (B, Ho, Wo, planes)

    # ---- conv2 (3x3, stride 1) -> bn2 -> (+residual) -> relu : one fused kernel ----
    # TODO(synk): out1 still makes one bf16 HBM round trip between the two convs;
    # fully fusing both 3x3 convs would require halo exchange between conv1 tiles.
    xf2, taps2, _, _, Wg2, Mg2 = build_tap_layout(out1, 1)

    if has_downsample:
        sd, bd = fold_bn(params["down_bn"])
        wd = prep_w1x1(params["down_w"], sd, coutp)
        shiftd = _pad_row(bd, coutp)
        xd = x_bf[:, ::stride, ::stride, :]                      # 1x1 conv, stride s, pad 0
        xd = jnp.pad(xd, ((0, 0), (0, 0), (0, Wg2 - Wo), (0, 0))).reshape(B, Mg2, C)
        out = fused_conv_bn(xf2, taps2, w2, shift2 + shiftd, Mg2,
                            down=(xd, wd), apply_relu=True, out_dtype=jnp.float32)
    else:
        assert stride == 1 and C == planes
        res = jnp.pad(x_bf, ((0, 0), (0, 0), (0, Wg2 - W), (0, coutp - C)))
        res = res.reshape(B, Mg2, coutp)
        out = fused_conv_bn(xf2, taps2, w2, shift2, Mg2,
                            residual=res, apply_relu=True, out_dtype=jnp.float32)

    out = out.reshape(B, Ho, Wg2, coutp)[:, :, :Wo, :planes]
    out = out.reshape(N, T, Ho, Wo, planes).astype(x_ncthw.dtype)
    return jnp.transpose(out, (0, 4, 1, 2, 3))                   # back to NCTHW


# ----------------------------------------------------------------------------
# Pure-JAX reference.  quantized=True mirrors the kernel's bf16 rounding of
# activations / folded weights (accumulation stays f32) for a tight check.
# ----------------------------------------------------------------------------
def basicblock3d_reference(x_ncthw, params, stride, has_downsample, quantized=False):
    cast = ((lambda a: a.astype(jnp.bfloat16).astype(jnp.float32))
            if quantized else (lambda a: a))
    N, C, T, H, W = x_ncthw.shape
    x = jnp.transpose(x_ncthw, (0, 2, 3, 4, 1)).reshape(N * T, H, W, C)
    x = cast(x)

    def conv_bn(inp, w_oihw, bn, s, pad):
        scale, shift = fold_bn(bn)
        w = cast(w_oihw * scale[:, None, None, None])
        y = lax.conv_general_dilated(
            inp, jnp.transpose(w, (2, 3, 1, 0)), (s, s), [(pad, pad), (pad, pad)],
            dimension_numbers=("NHWC", "HWIO", "NHWC"),
            precision=lax.Precision.HIGHEST)
        return y + shift

    out = jnp.maximum(conv_bn(x, params["conv1_w"], params["bn1"], stride, 1), 0.0)
    out = cast(out)
    out = conv_bn(out, params["conv2_w"], params["bn2"], 1, 1)
    residual = (conv_bn(x, params["down_w"], params["down_bn"], stride, 0)
                if has_downsample else x)
    out = jnp.maximum(out + residual, 0.0)
    NT, Ho, Wo, P = out.shape
    return jnp.transpose(out.reshape(N, T, Ho, Wo, P), (0, 4, 1, 2, 3))


# ----------------------------------------------------------------------------
# Deterministic synthetic parameters (not a checkpoint)
# ----------------------------------------------------------------------------
def make_params(key, c_in, planes, has_downsample):
    ks = jax.random.split(key, 8)

    def bn(kg, kb, n):
        gamma = 0.5 + jax.random.uniform(kg, (n,), jnp.float32)
        beta = 0.1 * jax.random.normal(kb, (n,), jnp.float32)
        mean = 0.05 * jax.random.normal(jax.random.fold_in(kg, 1), (n,), jnp.float32)
        var = 0.5 + jax.random.uniform(jax.random.fold_in(kb, 1), (n,), jnp.float32)
        return (gamma, beta, mean, var, jnp.float32(1e-5))

    params = {
        "conv1_w": 0.1 * jax.random.normal(ks[0], (planes, c_in, 3, 3), jnp.float32),
        "bn1": bn(ks[1], ks[2], planes),
        "conv2_w": 0.1 * jax.random.normal(ks[3], (planes, planes, 3, 3), jnp.float32),
        "bn2": bn(ks[4], ks[5], planes),
    }
    if has_downsample:
        params["down_w"] = 0.1 * jax.random.normal(ks[6], (planes, c_in, 1, 1), jnp.float32)
        params["down_bn"] = bn(ks[7], jax.random.fold_in(ks[7], 7), planes)
    return params


if __name__ == "__main__":
    key = jax.random.PRNGKey(0)
    kx, kp1, kp2 = jax.random.split(key, 3)

    N, C, T, H, W = 2, 4, 3, 8, 8
    x = jax.random.normal(kx, (N, C, T, H, W), jnp.float32)

    def check(y, params, stride, has_ds, expect_shape):
        assert y.shape == expect_shape, y.shape
        ref_q = basicblock3d_reference(x, params, stride, has_ds, quantized=True)
        ref_f = basicblock3d_reference(x, params, stride, has_ds, quantized=False)
        err_q = float(jnp.max(jnp.abs(y - ref_q)))
        rel_f = float(jnp.linalg.norm((y - ref_f).ravel())
                      / (jnp.linalg.norm(ref_f.ravel()) + 1e-6))
        assert err_q < 3e-2, f"quantized-ref max abs err {err_q}"
        assert rel_f < 2e-2, f"f32-ref relative L2 err {rel_f}"

    # Case 1: identity-residual block (stride 1, same channels, no downsample)
    params1 = make_params(kp1, c_in=C, planes=C, has_downsample=False)
    fwd1 = jax.jit(functools.partial(basicblock3d_forward, stride=1, has_downsample=False))
    y1 = jax.block_until_ready(fwd1(x, params1))
    check(y1, params1, 1, False, (N, C, T, H, W))

    # Case 2: downsampling block (stride 2, channel expansion, fused 1x1 conv+BN residual)
    planes = 8
    params2 = make_params(kp2, c_in=C, planes=planes, has_downsample=True)
    fwd2 = jax.jit(functools.partial(basicblock3d_forward, stride=2, has_downsample=True))
    y2 = jax.block_until_ready(fwd2(x, params2))
    check(y2, params2, 2, True, (N, planes, T, H // 2, W // 2))

    print("KERNEL_OK")
</pallas_src>

<mosaic_0001>
module attributes {stable_mosaic.version = 11 : i64} {
  func.func @_conv_bn_kernel(%arg0: i32, %arg1: memref<1x120x4xbf16, #tpu.memory_space<vmem>>, %arg2: memref<9x4x128xbf16, #tpu.memory_space<vmem>>, %arg3: memref<1x128xf32, #tpu.memory_space<vmem>>, %arg4: memref<1x80x128xbf16, #tpu.memory_space<vmem>>) attributes {dimension_semantics = [#tpu.dimension_semantics<parallel>], iteration_bounds = array<i64: 6>, scalar_prefetch = 0 : i64, scratch_operands = 0 : i64, tpu.core_type = #tpu.core_type<tc>, window_params = [{transform_indices = @transform_0, window_bounds = array<i64: 1, 120, 4>}, {pipeline_mode = #tpu.pipeline_mode<synchronous>, transform_indices = @transform_1, window_bounds = array<i64: 9, 4, 128>}, {pipeline_mode = #tpu.pipeline_mode<synchronous>, transform_indices = @transform_2, window_bounds = array<i64: 1, 128>}, {transform_indices = @transform_3, window_bounds = array<i64: 1, 80, 128>}]} {
    %cst = arith.constant 0.000000e+00 : f32
    %0 = vector.broadcast %cst : f32 to vector<80x128xf32>
    %c0 = arith.constant 0 : index
    %c0_0 = arith.constant 0 : index
    %c0_1 = arith.constant 0 : index
    %1 = vector.load %arg1[%c0, %c0_0, %c0_1] : memref<1x120x4xbf16, #tpu.memory_space<vmem>>, vector<1x80x4xbf16>
    %2 = vector.shape_cast %1 : vector<1x80x4xbf16> to vector<80x4xbf16>
    %c0_2 = arith.constant 0 : index
    %c0_3 = arith.constant 0 : index
    %c0_4 = arith.constant 0 : index
    %3 = vector.load %arg2[%c0_2, %c0_3, %c0_4] : memref<9x4x128xbf16, #tpu.memory_space<vmem>>, vector<1x4x128xbf16>
    %4 = vector.shape_cast %3 : vector<1x4x128xbf16> to vector<4x128xbf16>
    %cst_5 = arith.constant dense<0.000000e+00> : vector<80x128xf32>
    %5 = tpu.matmul %2, %4, %cst_5 {dimension_numbers = #tpu.dot_dimension_numbers<[1], [0], [0], [1], [0, 0, 1, 1], [], []>} : vector<80x4xbf16>, vector<4x128xbf16>, vector<80x128xf32> -> vector<80x128xf32>
    %6 = arith.addf %0, %5 : vector<80x128xf32>
    %c0_6 = arith.constant 0 : index
    %c1 = arith.constant 1 : index
    %c0_7 = arith.constant 0 : index
    %7 = vector.load %arg1[%c0_6, %c1, %c0_7] : memref<1x120x4xbf16, #tpu.memory_space<vmem>>, vector<1x80x4xbf16>
    %8 = vector.shape_cast %7 : vector<1x80x4xbf16> to vector<80x4xbf16>
    %c1_8 = arith.constant 1 : index
    %c0_9 = arith.constant 0 : index
    %c0_10 = arith.constant 0 : index
    %9 = vector.load %arg2[%c1_8, %c0_9, %c0_10] : memref<9x4x128xbf16, #tpu.memory_space<vmem>>, vector<1x4x128xbf16>
    %10 = vector.shape_cast %9 : vector<1x4x128xbf16> to vector<4x128xbf16>
    %cst_11 = arith.constant dense<0.000000e+00> : vector<80x128xf32>
    %11 = tpu.matmul %8, %10, %cst_11 {dimension_numbers = #tpu.dot_dimension_numbers<[1], [0], [0], [1], [0, 0, 1, 1], [], []>} : vector<80x4xbf16>, vector<4x128xbf16>, vector<80x128xf32> -> vector<80x128xf32>
    %12 = arith.addf %6, %11 : vector<80x128xf32>
    %c0_12 = arith.constant 0 : index
    %c2 = arith.constant 2 : index
    %c0_13 = arith.constant 0 : index
    %13 = vector.load %arg1[%c0_12, %c2, %c0_13] : memref<1x120x4xbf16, #tpu.memory_space<vmem>>, vector<1x80x4xbf16>
    %14 = vector.shape_cast %13 : vector<1x80x4xbf16> to vector<80x4xbf16>
    %c2_14 = arith.constant 2 : index
    %c0_15 = arith.constant 0 : index
    %c0_16 = arith.constant 0 : index
    %15 = vector.load %arg2[%c2_14, %c0_15, %c0_16] : memref<9x4x128xbf16, #tpu.memory_space<vmem>>, vector<1x4x128xbf16>
    %16 = vector.shape_cast %15 : vector<1x4x128xbf16> to vector<4x128xbf16>
    %cst_17 = arith.constant dense<0.000000e+00> : vector<80x128xf32>
    %17 = tpu.matmul %14, %16, %cst_17 {dimension_numbers = #tpu.dot_dimension_numbers<[1], [0], [0], [1], [0, 0, 1, 1], [], []>} : vector<80x4xbf16>, vector<4x128xbf16>, vector<80x128xf32> -> vector<80x128xf32>
    %18 = arith.addf %12, %17 : vector<80x128xf32>
    %c0_18 = arith.constant 0 : index
    %c10 = arith.constant 10 : index
    %c0_19 = arith.constant 0 : index
    %19 = vector.load %arg1[%c0_18, %c10, %c0_19] : memref<1x120x4xbf16, #tpu.memory_space<vmem>>, vector<1x80x4xbf16>
    %20 = vector.shape_cast %19 : vector<1x80x4xbf16> to vector<80x4xbf16>
    %c3 = arith.constant 3 : index
    %c0_20 = arith.constant 0 : index
    %c0_21 = arith.constant 0 : index
    %21 = vector.load %arg2[%c3, %c0_20, %c0_21] : memref<9x4x128xbf16, #tpu.memory_space<vmem>>, vector<1x4x128xbf16>
    %22 = vector.shape_cast %21 : vector<1x4x128xbf16> to vector<4x128xbf16>
    %cst_22 = arith.constant dense<0.000000e+00> : vector<80x128xf32>
    %23 = tpu.matmul %20, %22, %cst_22 {dimension_numbers = #tpu.dot_dimension_numbers<[1], [0], [0], [1], [0, 0, 1, 1], [], []>} : vector<80x4xbf16>, vector<4x128xbf16>, vector<80x128xf32> -> vector<80x128xf32>
    %24 = arith.addf %18, %23 : vector<80x128xf32>
    %c0_23 = arith.constant 0 : index
    %c11 = arith.constant 11 : index
    %c0_24 = arith.constant 0 : index
    %25 = vector.load %arg1[%c0_23, %c11, %c0_24] : memref<1x120x4xbf16, #tpu.memory_space<vmem>>, vector<1x80x4xbf16>
    %26 = vector.shape_cast %25 : vector<1x80x4xbf16> to vector<80x4xbf16>
    %c4 = arith.constant 4 : index
    %c0_25 = arith.constant 0 : index
    %c0_26 = arith.constant 0 : index
    %27 = vector.load %arg2[%c4, %c0_25, %c0_26] : memref<9x4x128xbf16, #tpu.memory_space<vmem>>, vector<1x4x128xbf16>
    %28 = vector.shape_cast %27 : vector<1x4x128xbf16> to vector<4x128xbf16>
    %cst_27 = arith.constant dense<0.000000e+00> : vector<80x128xf32>
    %29 = tpu.matmul %26, %28, %cst_27 {dimension_numbers = #tpu.dot_dimension_numbers<[1], [0], [0], [1], [0, 0, 1, 1], [], []>} : vector<80x4xbf16>, vector<4x128xbf16>, vector<80x128xf32> -> vector<80x128xf32>
    %30 = arith.addf %24, %29 : vector<80x128xf32>
    %c0_28 = arith.constant 0 : index
    %c12 = arith.constant 12 : index
    %c0_29 = arith.constant 0 : index
    %31 = vector.load %arg1[%c0_28, %c12, %c0_29] : memref<1x120x4xbf16, #tpu.memory_space<vmem>>, vector<1x80x4xbf16>
    %32 = vector.shape_cast %31 : vector<1x80x4xbf16> to vector<80x4xbf16>
    %c5 = arith.constant 5 : index
    %c0_30 = arith.constant 0 : index
    %c0_31 = arith.constant 0 : index
    %33 = vector.load %arg2[%c5, %c0_30, %c0_31] : memref<9x4x128xbf16, #tpu.memory_space<vmem>>, vector<1x4x128xbf16>
    %34 = vector.shape_cast %33 : vector<1x4x128xbf16> to vector<4x128xbf16>
    %cst_32 = arith.constant dense<0.000000e+00> : vector<80x128xf32>
    %35 = tpu.matmul %32, %34, %cst_32 {dimension_numbers = #tpu.dot_dimension_numbers<[1], [0], [0], [1], [0, 0, 1, 1], [], []>} : vector<80x4xbf16>, vector<4x128xbf16>, vector<80x128xf32> -> vector<80x128xf32>
    %36 = arith.addf %30, %35 : vector<80x128xf32>
    %c0_33 = arith.constant 0 : index
    %c20 = arith.constant 20 : index
    %c0_34 = arith.constant 0 : index
    %37 = vector.load %arg1[%c0_33, %c20, %c0_34] : memref<1x120x4xbf16, #tpu.memory_space<vmem>>, vector<1x80x4xbf16>
    %38 = vector.shape_cast %37 : vector<1x80x4xbf16> to vector<80x4xbf16>
    %c6 = arith.constant 6 : index
    %c0_35 = arith.constant 0 : index
    %c0_36 = arith.constant 0 : index
    %39 = vector.load %arg2[%c6, %c0_35, %c0_36] : memref<9x4x128xbf16, #tpu.memory_space<vmem>>, vector<1x4x128xbf16>
    %40 = vector.shape_cast %39 : vector<1x4x128xbf16> to vector<4x128xbf16>
    %cst_37 = arith.constant dense<0.000000e+00> : vector<80x128xf32>
    %41 = tpu.matmul %38, %40, %cst_37 {dimension_numbers = #tpu.dot_dimension_numbers<[1], [0], [0], [1], [0, 0, 1, 1], [], []>} : vector<80x4xbf16>, vector<4x128xbf16>, vector<80x128xf32> -> vector<80x128xf32>
    %42 = arith.addf %36, %41 : vector<80x128xf32>
    %c0_38 = arith.constant 0 : index
    %c21 = arith.constant 21 : index
    %c0_39 = arith.constant 0 : index
    %43 = vector.load %arg1[%c0_38, %c21, %c0_39] : memref<1x120x4xbf16, #tpu.memory_space<vmem>>, vector<1x80x4xbf16>
    %44 = vector.shape_cast %43 : vector<1x80x4xbf16> to vector<80x4xbf16>
    %c7 = arith.constant 7 : index
    %c0_40 = arith.constant 0 : index
    %c0_41 = arith.constant 0 : index
    %45 = vector.load %arg2[%c7, %c0_40, %c0_41] : memref<9x4x128xbf16, #tpu.memory_space<vmem>>, vector<1x4x128xbf16>
    %46 = vector.shape_cast %45 : vector<1x4x128xbf16> to vector<4x128xbf16>
    %cst_42 = arith.constant dense<0.000000e+00> : vector<80x128xf32>
    %47 = tpu.matmul %44, %46, %cst_42 {dimension_numbers = #tpu.dot_dimension_numbers<[1], [0], [0], [1], [0, 0, 1, 1], [], []>} : vector<80x4xbf16>, vector<4x128xbf16>, vector<80x128xf32> -> vector<80x128xf32>
    %48 = arith.addf %42, %47 : vector<80x128xf32>
    %c0_43 = arith.constant 0 : index
    %c22 = arith.constant 22 : index
    %c0_44 = arith.constant 0 : index
    %49 = vector.load %arg1[%c0_43, %c22, %c0_44] : memref<1x120x4xbf16, #tpu.memory_space<vmem>>, vector<1x80x4xbf16>
    %50 = vector.shape_cast %49 : vector<1x80x4xbf16> to vector<80x4xbf16>
    %c8 = arith.constant 8 : index
    %c0_45 = arith.constant 0 : index
    %c0_46 = arith.constant 0 : index
    %51 = vector.load %arg2[%c8, %c0_45, %c0_46] : memref<9x4x128xbf16, #tpu.memory_space<vmem>>, vector<1x4x128xbf16>
    %52 = vector.shape_cast %51 : vector<1x4x128xbf16> to vector<4x128xbf16>
    %cst_47 = arith.constant dense<0.000000e+00> : vector<80x128xf32>
    %53 = tpu.matmul %50, %52, %cst_47 {dimension_numbers = #tpu.dot_dimension_numbers<[1], [0], [0], [1], [0, 0, 1, 1], [], []>} : vector<80x4xbf16>, vector<4x128xbf16>, vector<80x128xf32> -> vector<80x128xf32>
    %54 = arith.addf %48, %53 : vector<80x128xf32>
    %c0_48 = arith.constant 0 : index
    %c0_49 = arith.constant 0 : index
    %55 = vector.load %arg3[%c0_48, %c0_49] : memref<1x128xf32, #tpu.memory_space<vmem>>, vector<1x128xf32>
    %56 = vector.broadcast %55 : vector<1x128xf32> to vector<80x128xf32>
    %57 = arith.addf %54, %56 : vector<80x128xf32>
    %cst_50 = arith.constant 0.000000e+00 : f32
    %58 = vector.broadcast %cst_50 : f32 to vector<80x128xf32>
    %59 = arith.maximumf %57, %58 : vector<80x128xf32>
    %60 = arith.truncf %59 : vector<80x128xf32> to vector<80x128xbf16>
    %c0_51 = arith.constant 0 : index
    %c0_52 = arith.constant 0 : index
    %c0_53 = arith.constant 0 : index
    %61 = vector.load %arg4[%c0_51, %c0_52, %c0_53] : memref<1x80x128xbf16, #tpu.memory_space<vmem>>, vector<1x80x128xbf16>
    %62 = vector.shape_cast %61 : vector<1x80x128xbf16> to vector<80x128xbf16>
    %63 = vector.shape_cast %60 : vector<80x128xbf16> to vector<1x80x128xbf16>
    tpu.vector_store %arg4[%c0_51, %c0_52, %c0_53], %63 {strides = array<i32>} : memref<1x80x128xbf16, #tpu.memory_space<vmem>>, vector<1x80x128xbf16>,
    return
  }
  func.func @transform_0(%arg0: i32) -> (i32, i32, i32) {
    %c0_i32 = arith.constant 0 : i32
    %c0_i32_0 = arith.constant 0 : i32
    %c0_i32_1 = arith.constant 0 : i32
    return %arg0, %c0_i32, %c0_i32_0 : i32, i32, i32
  }
  func.func @transform_1(%arg0: i32) -> (i32, i32, i32) {
    %c0_i32 = arith.constant 0 : i32
    %c0_i32_0 = arith.constant 0 : i32
    %c0_i32_1 = arith.constant 0 : i32
    %c0_i32_2 = arith.constant 0 : i32
    return %c0_i32, %c0_i32_0, %c0_i32_1 : i32, i32, i32
  }
  func.func @transform_2(%arg0: i32) -> (i32, i32) {
    %c0_i32 = arith.constant 0 : i32
    %c0_i32_0 = arith.constant 0 : i32
    %c0_i32_1 = arith.constant 0 : i32
    return %c0_i32, %c0_i32_0 : i32, i32
  }
  func.func @transform_3(%arg0: i32) -> (i32, i32, i32) {
    %c0_i32 = arith.constant 0 : i32
    %c0_i32_0 = arith.constant 0 : i32
    %c0_i32_1 = arith.constant 0 : i32
    return %arg0, %c0_i32, %c0_i32_0 : i32, i32, i32
  }
}

module attributes {stable_mosaic.version = 11 : i64} {
  func.func @_conv_bn_kernel(%arg0: i32, %arg1: memref<1x120x4xbf16, #tpu.memory_space<vmem>>, %arg2: memref<9x4x128xbf16, #tpu.memory_space<vmem>>, %arg3: memref<1x128xf32, #tpu.memory_space<vmem>>, %arg4: memref<1x80x128xbf16, #tpu.memory_space<vmem>>, %arg5: memref<1x80x128xf32, #tpu.memory_space<vmem>>) attributes {dimension_semantics = [#tpu.dimension_semantics<parallel>], iteration_bounds = array<i64: 6>, scalar_prefetch = 0 : i64, scratch_operands = 0 : i64, tpu.core_type = #tpu.core_type<tc>, window_params = [{transform_indices = @transform_0, window_bounds = array<i64: 1, 120, 4>}, {pipeline_mode = #tpu.pipeline_mode<synchronous>, transform_indices = @transform_1, window_bounds = array<i64: 9, 4, 128>}, {pipeline_mode = #tpu.pipeline_mode<synchronous>, transform_indices = @transform_2, window_bounds = array<i64: 1, 128>}, {transform_indices = @transform_3, window_bounds = array<i64: 1, 80, 128>}, {transform_indices = @transform_4, window_bounds = array<i64: 1, 80, 128>}]} {
    %cst = arith.constant 0.000000e+00 : f32
    %0 = vector.broadcast %cst : f32 to vector<80x128xf32>
    %c0 = arith.constant 0 : index
    %c0_0 = arith.constant 0 : index
    %c0_1 = arith.constant 0 : index
    %1 = vector.load %arg1[%c0, %c0_0, %c0_1] : memref<1x120x4xbf16, #tpu.memory_space<vmem>>, vector<1x80x4xbf16>
    %2 = vector.shape_cast %1 : vector<1x80x4xbf16> to vector<80x4xbf16>
    %c0_2 = arith.constant 0 : index
    %c0_3 = arith.constant 0 : index
    %c0_4 = arith.constant 0 : index
    %3 = vector.load %arg2[%c0_2, %c0_3, %c0_4] : memref<9x4x128xbf16, #tpu.memory_space<vmem>>, vector<1x4x128xbf16>
    %4 = vector.shape_cast %3 : vector<1x4x128xbf16> to vector<4x128xbf16>
    %cst_5 = arith.constant dense<0.000000e+00> : vector<80x128xf32>
    %5 = tpu.matmul %2, %4, %cst_5 {dimension_numbers = #tpu.dot_dimension_numbers<[1], [0], [0], [1], [0, 0, 1, 1], [], []>} : vector<80x4xbf16>, vector<4x128xbf16>, vector<80x128xf32> -> vector<80x128xf32>
    %6 = arith.addf %0, %5 : vector<80x128xf32>
    %c0_6 = arith.constant 0 : index
    %c1 = arith.constant 1 : index
    %c0_7 = arith.constant 0 : index
    %7 = vector.load %arg1[%c0_6, %c1, %c0_7] : memref<1x120x4xbf16, #tpu.memory_space<vmem>>, vector<1x80x4xbf16>
    %8 = vector.shape_cast %7 : vector<1x80x4xbf16> to vector<80x4xbf16>
    %c1_8 = arith.constant 1 : index
    %c0_9 = arith.constant 0 : index
    %c0_10 = arith.constant 0 : index
    %9 = vector.load %arg2[%c1_8, %c0_9, %c0_10] : memref<9x4x128xbf16, #tpu.memory_space<vmem>>, vector<1x4x128xbf16>
    %10 = vector.shape_cast %9 : vector<1x4x128xbf16> to vector<4x128xbf16>
    %cst_11 = arith.constant dense<0.000000e+00> : vector<80x128xf32>
    %11 = tpu.matmul %8, %10, %cst_11 {dimension_numbers = #tpu.dot_dimension_numbers<[1], [0], [0], [1], [0, 0, 1, 1], [], []>} : vector<80x4xbf16>, vector<4x128xbf16>, vector<80x128xf32> -> vector<80x128xf32>
    %12 = arith.addf %6, %11 : vector<80x128xf32>
    %c0_12 = arith.constant 0 : index
    %c2 = arith.constant 2 : index
    %c0_13 = arith.constant 0 : index
    %13 = vector.load %arg1[%c0_12, %c2, %c0_13] : memref<1x120x4xbf16, #tpu.memory_space<vmem>>, vector<1x80x4xbf16>
    %14 = vector.shape_cast %13 : vector<1x80x4xbf16> to vector<80x4xbf16>
    %c2_14 = arith.constant 2 : index
    %c0_15 = arith.constant 0 : index
    %c0_16 = arith.constant 0 : index
    %15 = vector.load %arg2[%c2_14, %c0_15, %c0_16] : memref<9x4x128xbf16, #tpu.memory_space<vmem>>, vector<1x4x128xbf16>
    %16 = vector.shape_cast %15 : vector<1x4x128xbf16> to vector<4x128xbf16>
    %cst_17 = arith.constant dense<0.000000e+00> : vector<80x128xf32>
    %17 = tpu.matmul %14, %16, %cst_17 {dimension_numbers = #tpu.dot_dimension_numbers<[1], [0], [0], [1], [0, 0, 1, 1], [], []>} : vector<80x4xbf16>, vector<4x128xbf16>, vector<80x128xf32> -> vector<80x128xf32>
    %18 = arith.addf %12, %17 : vector<80x128xf32>
    %c0_18 = arith.constant 0 : index
    %c10 = arith.constant 10 : index
    %c0_19 = arith.constant 0 : index
    %19 = vector.load %arg1[%c0_18, %c10, %c0_19] : memref<1x120x4xbf16, #tpu.memory_space<vmem>>, vector<1x80x4xbf16>
    %20 = vector.shape_cast %19 : vector<1x80x4xbf16> to vector<80x4xbf16>
    %c3 = arith.constant 3 : index
    %c0_20 = arith.constant 0 : index
    %c0_21 = arith.constant 0 : index
    %21 = vector.load %arg2[%c3, %c0_20, %c0_21] : memref<9x4x128xbf16, #tpu.memory_space<vmem>>, vector<1x4x128xbf16>
    %22 = vector.shape_cast %21 : vector<1x4x128xbf16> to vector<4x128xbf16>
    %cst_22 = arith.constant dense<0.000000e+00> : vector<80x128xf32>
    %23 = tpu.matmul %20, %22, %cst_22 {dimension_numbers = #tpu.dot_dimension_numbers<[1], [0], [0], [1], [0, 0, 1, 1], [], []>} : vector<80x4xbf16>, vector<4x128xbf16>, vector<80x128xf32> -> vector<80x128xf32>
    %24 = arith.addf %18, %23 : vector<80x128xf32>
    %c0_23 = arith.constant 0 : index
    %c11 = arith.constant 11 : index
    %c0_24 = arith.constant 0 : index
    %25 = vector.load %arg1[%c0_23, %c11, %c0_24] : memref<1x120x4xbf16, #tpu.memory_space<vmem>>, vector<1x80x4xbf16>
    %26 = vector.shape_cast %25 : vector<1x80x4xbf16> to vector<80x4xbf16>
    %c4 = arith.constant 4 : index
    %c0_25 = arith.constant 0 : index
    %c0_26 = arith.constant 0 : index
    %27 = vector.load %arg2[%c4, %c0_25, %c0_26] : memref<9x4x128xbf16, #tpu.memory_space<vmem>>, vector<1x4x128xbf16>
    %28 = vector.shape_cast %27 : vector<1x4x128xbf16> to vector<4x128xbf16>
    %cst_27 = arith.constant dense<0.000000e+00> : vector<80x128xf32>
    %29 = tpu.matmul %26, %28, %cst_27 {dimension_numbers = #tpu.dot_dimension_numbers<[1], [0], [0], [1], [0, 0, 1, 1], [], []>} : vector<80x4xbf16>, vector<4x128xbf16>, vector<80x128xf32> -> vector<80x128xf32>
    %30 = arith.addf %24, %29 : vector<80x128xf32>
    %c0_28 = arith.constant 0 : index
    %c12 = arith.constant 12 : index
    %c0_29 = arith.constant 0 : index
    %31 = vector.load %arg1[%c0_28, %c12, %c0_29] : memref<1x120x4xbf16, #tpu.memory_space<vmem>>, vector<1x80x4xbf16>
    %32 = vector.shape_cast %31 : vector<1x80x4xbf16> to vector<80x4xbf16>
    %c5 = arith.constant 5 : index
    %c0_30 = arith.constant 0 : index
    %c0_31 = arith.constant 0 : index
    %33 = vector.load %arg2[%c5, %c0_30, %c0_31] : memref<9x4x128xbf16, #tpu.memory_space<vmem>>, vector<1x4x128xbf16>
    %34 = vector.shape_cast %33 : vector<1x4x128xbf16> to vector<4x128xbf16>
    %cst_32 = arith.constant dense<0.000000e+00> : vector<80x128xf32>
    %35 = tpu.matmul %32, %34, %cst_32 {dimension_numbers = #tpu.dot_dimension_numbers<[1], [0], [0], [1], [0, 0, 1, 1], [], []>} : vector<80x4xbf16>, vector<4x128xbf16>, vector<80x128xf32> -> vector<80x128xf32>
    %36 = arith.addf %30, %35 : vector<80x128xf32>
    %c0_33 = arith.constant 0 : index
    %c20 = arith.constant 20 : index
    %c0_34 = arith.constant 0 : index
    %37 = vector.load %arg1[%c0_33, %c20, %c0_34] : memref<1x120x4xbf16, #tpu.memory_space<vmem>>, vector<1x80x4xbf16>
    %38 = vector.shape_cast %37 : vector<1x80x4xbf16> to vector<80x4xbf16>
    %c6 = arith.constant 6 : index
    %c0_35 = arith.constant 0 : index
    %c0_36 = arith.constant 0 : index
    %39 = vector.load %arg2[%c6, %c0_35, %c0_36] : memref<9x4x128xbf16, #tpu.memory_space<vmem>>, vector<1x4x128xbf16>
    %40 = vector.shape_cast %39 : vector<1x4x128xbf16> to vector<4x128xbf16>
    %cst_37 = arith.constant dense<0.000000e+00> : vector<80x128xf32>
    %41 = tpu.matmul %38, %40, %cst_37 {dimension_numbers = #tpu.dot_dimension_numbers<[1], [0], [0], [1], [0, 0, 1, 1], [], []>} : vector<80x4xbf16>, vector<4x128xbf16>, vector<80x128xf32> -> vector<80x128xf32>
    %42 = arith.addf %36, %41 : vector<80x128xf32>
    %c0_38 = arith.constant 0 : index
    %c21 = arith.constant 21 : index
    %c0_39 = arith.constant 0 : index
    %43 = vector.load %arg1[%c0_38, %c21, %c0_39] : memref<1x120x4xbf16, #tpu.memory_space<vmem>>, vector<1x80x4xbf16>
    %44 = vector.shape_cast %43 : vector<1x80x4xbf16> to vector<80x4xbf16>
    %c7 = arith.constant 7 : index
    %c0_40 = arith.constant 0 : index
    %c0_41 = arith.constant 0 : index
    %45 = vector.load %arg2[%c7, %c0_40, %c0_41] : memref<9x4x128xbf16, #tpu.memory_space<vmem>>, vector<1x4x128xbf16>
    %46 = vector.shape_cast %45 : vector<1x4x128xbf16> to vector<4x128xbf16>
    %cst_42 = arith.constant dense<0.000000e+00> : vector<80x128xf32>
    %47 = tpu.matmul %44, %46, %cst_42 {dimension_numbers = #tpu.dot_dimension_numbers<[1], [0], [0], [1], [0, 0, 1, 1], [], []>} : vector<80x4xbf16>, vector<4x128xbf16>, vector<80x128xf32> -> vector<80x128xf32>
    %48 = arith.addf %42, %47 : vector<80x128xf32>
    %c0_43 = arith.constant 0 : index
    %c22 = arith.constant 22 : index
    %c0_44 = arith.constant 0 : index
    %49 = vector.load %arg1[%c0_43, %c22, %c0_44] : memref<1x120x4xbf16, #tpu.memory_space<vmem>>, vector<1x80x4xbf16>
    %50 = vector.shape_cast %49 : vector<1x80x4xbf16> to vector<80x4xbf16>
    %c8 = arith.constant 8 : index
    %c0_45 = arith.constant 0 : index
    %c0_46 = arith.constant 0 : index
    %51 = vector.load %arg2[%c8, %c0_45, %c0_46] : memref<9x4x128xbf16, #tpu.memory_space<vmem>>, vector<1x4x128xbf16>
    %52 = vector.shape_cast %51 : vector<1x4x128xbf16> to vector<4x128xbf16>
    %cst_47 = arith.constant dense<0.000000e+00> : vector<80x128xf32>
    %53 = tpu.matmul %50, %52, %cst_47 {dimension_numbers = #tpu.dot_dimension_numbers<[1], [0], [0], [1], [0, 0, 1, 1], [], []>} : vector<80x4xbf16>, vector<4x128xbf16>, vector<80x128xf32> -> vector<80x128xf32>
    %54 = arith.addf %48, %53 : vector<80x128xf32>
    %c0_48 = arith.constant 0 : index
    %c0_49 = arith.constant 0 : index
    %55 = vector.load %arg3[%c0_48, %c0_49] : memref<1x128xf32, #tpu.memory_space<vmem>>, vector<1x128xf32>
    %56 = vector.broadcast %55 : vector<1x128xf32> to vector<80x128xf32>
    %57 = arith.addf %54, %56 : vector<80x128xf32>
    %c0_50 = arith.constant 0 : index
    %c0_51 = arith.constant 0 : index
    %c0_52 = arith.constant 0 : index
    %58 = vector.load %arg4[%c0_50, %c0_51, %c0_52] : memref<1x80x128xbf16, #tpu.memory_space<vmem>>, vector<1x80x128xbf16>
    %59 = vector.shape_cast %58 : vector<1x80x128xbf16> to vector<80x128xbf16>
    %60 = arith.extf %59 : vector<80x128xbf16> to vector<80x128xf32>
    %61 = arith.addf %57, %60 : vector<80x128xf32>
    %cst_53 = arith.constant 0.000000e+00 : f32
    %62 = vector.broadcast %cst_53 : f32 to vector<80x128xf32>
    %63 = arith.maximumf %61, %62 : vector<80x128xf32>
    %c0_54 = arith.constant 0 : index
    %c0_55 = arith.constant 0 : index
    %c0_56 = arith.constant 0 : index
    %64 = vector.load %arg5[%c0_54, %c0_55, %c0_56] : memref<1x80x128xf32, #tpu.memory_space<vmem>>, vector<1x80x128xf32>
    %65 = vector.shape_cast %64 : vector<1x80x128xf32> to vector<80x128xf32>
    %66 = vector.shape_cast %63 : vector<80x128xf32> to vector<1x80x128xf32>
    tpu.vector_store %arg5[%c0_54, %c0_55, %c0_56], %66 {strides = array<i32>} : memref<1x80x128xf32, #tpu.memory_space<vmem>>, vector<1x80x128xf32>,
    return
  }
  func.func @transform_0(%arg0: i32) -> (i32, i32, i32) {
    %c0_i32 = arith.constant 0 : i32
    %c0_i32_0 = arith.constant 0 : i32
    %c0_i32_1 = arith.constant 0 : i32
    return %arg0, %c0_i32, %c0_i32_0 : i32, i32, i32
  }
  func.func @transform_1(%arg0: i32) -> (i32, i32, i32) {
    %c0_i32 = arith.constant 0 : i32
    %c0_i32_0 = arith.constant 0 : i32
    %c0_i32_1 = arith.constant 0 : i32
    %c0_i32_2 = arith.constant 0 : i32
    return %c0_i32, %c0_i32_0, %c0_i32_1 : i32, i32, i32
  }
  func.func @transform_2(%arg0: i32) -> (i32, i32) {
    %c0_i32 = arith.constant 0 : i32
    %c0_i32_0 = arith.constant 0 : i32
    %c0_i32_1 = arith.constant 0 : i32
    return %c0_i32, %c0_i32_0 : i32, i32
  }
  func.func @transform_3(%arg0: i32) -> (i32, i32, i32) {
    %c0_i32 = arith.constant 0 : i32
    %c0_i32_0 = arith.constant 0 : i32
    %c0_i32_1 = arith.constant 0 : i32
    return %arg0, %c0_i32, %c0_i32_0 : i32, i32, i32
  }
  func.func @transform_4(%arg0: i32) -> (i32, i32, i32) {
    %c0_i32 = arith.constant 0 : i32
    %c0_i32_0 = arith.constant 0 : i32
    %c0_i32_1 = arith.constant 0 : i32
    return %arg0, %c0_i32, %c0_i32_0 : i32, i32, i32
  }
}

</mosaic_0001>

<bundles_post_ra>
// kernel: basicblock3d_forward.2
= control target key start
LH: loop header
LB: loop body
LE: loop exit
PB: predicated region body
PF: predicated region fallthrough
CT: control target
= control target key end

     0   :  { %s2009_s12 = smov 0   ;;  %s2418_s0 = inlined_call_operand.vmem [shape: bf16[6,120,4], index: 0, kind: input, shape index: {}]   ;;  %s2419_s1 = inlined_call_operand.vmem [shape: bf16[9,4,128], index: 1, kind: input, shape index: {}]   ;;  %s2420_s2 = inlined_call_operand.vmem [shape: f32[1,128], index: 2, kind: input, shape index: {}]   ;;  %s2421_s3 = inlined_call_operand.vmem [shape: bf16[6,80,128], index: 3, kind: output, shape index: {}]  }
   0x1 LB: > { %s1555_s13 = sadd.s32 4294967295, %s1985_s12   ;;  %p1559_p0 = scmp.ge.s32.totalorder %s1985_s12, 1  ;;  %s1985_s12 = sphi %s2009_s12, %s13_s12  }
   0x2   : > { %p137_p1 = scmp.lt.s32.totalorder %s1985_s12, 7 }
   0x4   : > { %p138_p2 = pnand %p1559_p0, %p137_p1 }
   0x5   : > { %v1562_v0 = vld [vmem:[%s2419_s1 + $0x2] sm:$0x3] (!%p138_p2)  ;;  %vm275_vm0 = vcmask (!%p138_p2), 1041408   ;;  %p161_p3 = scmp.lt.s32.totalorder (!%p138_p2), %s1555_s13, 5  ;;  %v1987_v1 = vmov (!%p138_p2), 0.0   ;;  %vm1988_vm1 = vmmov (!%p138_p2), 0  }
   0x6   : > { %141 = sbr.rel (%p138_p2) target bundleno = 426 (0x1aa), region = 32  ;;  %1744 = vmatprep.subr.bf16.mxu0 (!%p138_p2), %v1987_v1  ;;  %1942 = vmatprep.subr.bf16.mxu1 (!%p138_p2), %v1987_v1  ;;  %v277_v2 = vsel (!%p138_p2), %vm275_vm0, %v1562_v0, 0  ;;  %vm214_vm2 = vsmask.f32 (!%p138_p2), 7424  ;;  %v1579_v13 = vld [vmem:[%s2419_s1 + $0x4] sm:$0x3] (!%p138_p2) }
   0x7   : > { %1745 = vmatpush3.bf16.msra.mxu0 (!%p138_p2), %v277_v2  ;;  %1943 = vmatpush3.bf16.msra.mxu1 (!%p138_p2), %v277_v2  ;;  %vm259_vm3 = vcmask (!%p138_p2), 31744   ;;  %v182_v22 = vld [vmem:[%s2419_s1] sm:$0x3] (!%p138_p2)  ;;  %v472_v26 = vsel (!%p138_p2), %vm275_vm0, %v1579_v13, 0  ;;  %vm444_vm4 = vcmask (!%p138_p2), 1046528   ;;  %vm877_vm6 = vcmask (!%p138_p2), 1045504  }
   0x8   : > { %1746 = vmatprep.mubr.msk.bf16.mxu0 (!%p138_p2), %vm1988_vm1, %v1987_v1  ;;  %1758 = vmatprep.mubr.msk.bf16.mxu1 (!%p138_p2), %vm1988_vm1, %v1987_v1  ;;  %v363_v31 = vsel (!%p138_p2), %vm275_vm0, %v182_v22, 0  ;;  %v1586_v48 = vld [vmem:[%s2419_s1 + $0x6] sm:$0x3] (!%p138_p2)  ;;  %v1598_v53 = vld [vmem:[%s2419_s1 + $0x8] sm:$0x3] (!%p138_p2)  ;;  %vm1310_vm8 = vcmask (!%p138_p2), 1044480  }
   0x9   : > { %1788 = vmatprep.subr.bf16.mxu0 (!%p138_p2), %v1987_v1  ;;  %1766 = vmatprep.subr.bf16.mxu1 (!%p138_p2), %v1987_v1  ;;  %v625_v50 = vsel (!%p138_p2), %vm275_vm0, %v1586_v48, 0  ;;  %v786_v55 = vsel (!%p138_p2), %vm275_vm0, %v1598_v53, 0  ;;  %vm716_vm5 = vsmask.f32 (!%p138_p2), 6400  ;;  %vm1149_vm7 = vsmask.f32 (!%p138_p2), 5376 }
   0xd   : > { %s2423_s13 = smov (!%p161_p3, %s1555_s13), 5 }
   0xe   : > { %s1944_s16 = smul.u32 60, %s2423_s13 }
   0xf   : > { %s1945_s11 = smul.u32 40, %s2423_s13 }
  0x10   : > { %s2035_s19 = scalar_lea.vmem %s2418_s0, %s1944_s16 }
  0x11   : > { %v172_v3 = vld [vmem:[%s2035_s19] sm:$0xf]  ;;  %v2039_v4 = vld [vmem:[%s2035_s19 + $0x4] sm:$0xf]  ;;  %v2045_v6 = vld [vmem:[%s2035_s19 + $0x8] sm:$0xff]   ;;  %s2396_s16 = scalar_lea.vmem %s2421_s3, %s1945_s11 }
  0x12   : > { %v2042_v5 = vcombine.low %v172_v3, %v2039_v4  ;;  %v223_v9 = vshll.u32 %v2045_v6, 16  ;;  %v2051_v10 = vld [vmem:[%s2035_s19 + $0x18] sm:$0xff]   ;;  %v2054_v11 = vld [vmem:[%s2035_s19 + $0x20] sm:$0xff]   ;;  %v2057_v12 = vld [vmem:[%s2035_s19 + $0x10] sm:$0xff]   ;;  %v227_v23 = vshrl.u32 %v2045_v6, 16  ;;  %v446_v52 = vrot.slane %v2045_v6, 1 }
  0x13   : > { %v239_v16 = vshll.u32 %v2051_v10, 16  ;;  %v243_v17 = vshrl.u32 %v2051_v10, 16  ;;  %v247_v18 = vshll.u32 %v2054_v11, 16  ;;  %v2066_v19 = vld [vmem:[%s2035_s19 + $0x28] ss:$0 sps:$4 sm:$0x11]  }
  0x14   : > { %v216_v7 = vshrl.u32 %v2042_v5, 16  ;;  %v218_v8 = vshll.u32 %v2042_v5, 16  ;;  %v225_v15 = vrot.slane %v223_v9, 1  ;;  %v231_v24 = vshll.u32 %v2057_v12, 16  ;;  %v2090_v39 = vld [vmem:[%s2035_s19 + $0x24] sm:$0xff]   ;;  %v2161_v2 = vld [vmem:[%s2035_s19 + $0xc] sm:$0xff]  }
  0x15   : > { %v241_v21 = vrot.slane %v239_v16, 1  ;;  %v249_v25 = vrot.slane %v247_v18, 1  ;;  %v251_v29 = vshrl.u32 %v2054_v11, 16  ;;  %v255_v30 = vshll.u32 %v2066_v19, 16  ;;  %v438_v43 = vld [vmem:[%s2035_s19] sm:$0xe] }
  0x16   : > { %v220_v14 = vrot.slane %v218_v8, 1  ;;  %v229_v33 = vor.u32 %v227_v23, %v225_v15  ;;  %v233_v34 = vrot.slane %v231_v24, 1  ;;  %v235_v38 = vshrl.u32 %v2057_v12, 16  ;;  %v1968_v40 = vld [vmem:[%s2035_s19 + $0x2c] ss:$0 sps:$4 sm:$0x11]  }
  0x17   : > { %v245_v28 = vor.u32 %v243_v17, %v241_v21  ;;  %v253_v35 = vor.u32 %v251_v29, %v249_v25  ;;  %v257_v36 = vrot.slane %v255_v30, 1  ;;  %v605_v44 = vrot.slane %v2090_v39, 1  ;;  %v557_v61 = vld [vmem:[%s2035_s19 + $0x4] sm:$0xe]  ;;  %v2156_v62 = vld [vmem:[%s2035_s19 + $0x8] sm:$0xf] }
  0x18   : > { %v221_v20 = vor.u32 %v220_v14, %v216_v7  ;;  %v234_v37 = vsel %vm214_vm2, %v229_v33, %v233_v34  ;;  %v237_v42 = vor.u32 %v235_v38, %v233_v34  ;;  %v607_v45 = vrot.slane %v1968_v40, 1  ;;  %v2180_v18 = vld [vmem:[%s2035_s19 + $0x14] sm:$0xff]   ;;  %v1612_v24 = vld [vmem:[%s2419_s1 + $0xc] sm:$0x3]  ;;  %v2200_v30 = vld [vmem:[%s2035_s19 + $0x1c] sm:$0xff]  }
  0x19   : > { %v250_v32 = vsel %vm214_vm2, %v245_v28, %v249_v25  ;;  %v258_v41 = vsel %vm214_vm2, %v253_v35, %v257_v36  ;;  %v1580_v49 = vcombine.low %v438_v43, %v2039_v4  ;;  %v448_v56 = vrot.slane %v2057_v12, 1  ;;  %v2224_v48 = vld [vmem:[%s2035_s19 + $0x2c] ss:$0 sps:$4 sm:$0x33]   ;;  %v871_v53 = vld [vmem:[%s2035_s19 + $0x4] sm:$0xc] }
  0x1a   : > { %v226_v27 = vsel %vm214_vm2, %v221_v20, %v225_v15  ;;  %1759 = vmatmul.mubr.msk.bf16.vlgmr.msra.gmra.mrb[0].mxu1 %vm259_vm3, %v250_v32  ;;  %v2105_v46 = vsel %vm444_vm4, %v605_v44, %v607_v45  ;;  %v242_v47 = vsel %vm214_vm2, %v237_v42, %v241_v21  ;;  %v450_v58 = vrot.slane %v2051_v10, 1 }
  0x1b   : > { %1747 = vmatmul.mubr.msk.bf16.vlgmr.msra.gmra.mrb[0].mxu0 %vm259_vm3, %v226_v27  ;;  %1767 = vmatpush3.bf16.msra.mxu1 %v363_v31  ;;  %v445_v51 = vrot.slane %v1580_v49, 1  ;;  %v449_v57 = vsel %vm444_vm4, %v446_v52, %v448_v56  ;;  %v452_v60 = vrot.slane %v2054_v11, 1  ;;  %v1587_v0 = vcombine.low %v557_v61, %v2156_v62 }
  0x1c   : > { %1789 = vmatpush3.bf16.msra.mxu0 %v472_v26  ;;  %1750 = vmatprep.mubr.msk.bf16.mxu0 %vm1988_vm1, %v1987_v1  ;;  %v451_v59 = vsel %vm444_vm4, %v448_v56, %v450_v58  ;;  %v454_v3 = vrot.slane %v2066_v19, 1  ;;  %v729_v7 = vshll.u32 %v2161_v2, 16  ;;  %v599_v9 = vrot.slane %v2161_v2, 1 }
  0x1d   : > { %1832 = vmatprep.subr.bf16.mxu0 %v1987_v1  ;;  %1762 = vmatprep.mubr.msk.bf16.mxu1 %vm1988_vm1, %v1987_v1  ;;  %v447_v54 = vsel %vm444_vm4, %v445_v51, %v446_v52  ;;  %v453_v63 = vsel %vm444_vm4, %v450_v58, %v452_v60  ;;  %v718_v4 = vshrl.u32 %v1587_v0, 16  ;;  %v598_v8 = vrot.slane %v1587_v0, 1  ;;  %v990_v58 = vld [vmem:[%s2035_s19 + $0x8] sm:$0xc] }
  0x1e   : > { %1810 = vmatprep.subr.bf16.mxu1 %v1987_v1  ;;  %v731_v16 = vrot.slane %v729_v7, 2  ;;  %v735_v21 = vshrl.u32 %v2180_v18, 16  ;;  %v738_v22 = vshll.u32 %v2180_v18, 16  ;;  %v601_v23 = vrot.slane %v2180_v18, 1  ;;  %v1631_v7 = vld [vmem:[%s2419_s1 + $0x10] sm:$0x3] }
  0x1f   : > { %v720_v13 = vrot.slane %v718_v4, 1  ;;  %v600_v17 = vsel %vm444_vm4, %v598_v8, %v599_v9  ;;  %v1058_v28 = vsel %vm275_vm0, %v1612_v24, 0  ;;  %v744_v32 = vshrl.u32 %v2200_v30, 16 }
  0x20   : > { %v737_v26 = vrot.slane %v735_v21, 1  ;;  %v740_v27 = vrot.slane %v738_v22, 2  ;;  %v602_v29 = vsel %vm444_vm4, %v599_v9, %v601_v23  ;;  %v747_v33 = vshll.u32 %v2200_v30, 16  ;;  %v2275_v9 = vld [vmem:[%s2035_s19 + $0x18] sm:$0xff]  }
  0x21   : > { %v603_v34 = vrot.slane %v2200_v30, 1  ;;  %v746_v36 = vrot.slane %v744_v32, 1  ;;  %v756_v42 = vshll.u32 %v2090_v39, 16  ;;  %v762_v51 = vshrl.u32 %v2224_v48, 16 }
  0x22   : > { %1763 = vmatmul.mubr.msk.bf16.gmra.mrb[4].mxu1 %vm259_vm3, %v258_v41  ;;  %v741_v31 = vor.u32 %v740_v27, %v737_v26  ;;  %v753_v41 = vshrl.u32 %v2090_v39, 16  ;;  %v765_v52 = vshll.u32 %v2224_v48, 16  ;;  %v1606_v56 = vcombine.low %v871_v53, %v2156_v62 }
  0x23   : > { %1751 = vmatmul.mubr.msk.bf16.gmra.mrb[4].mxu0 %vm259_vm3, %v234_v37  ;;  %1768 = vmatprep.mubr.msk.bf16.mxu1 %vm1988_vm1, %v1987_v1  ;;  %v749_v37 = vrot.slane %v747_v33, 2  ;;  %v604_v38 = vsel %vm444_vm4, %v601_v23, %v603_v34  ;;  %v606_v49 = vsel %vm444_vm4, %v603_v34, %v605_v44  ;;  %v879_v61 = vrot.slane %v2161_v2, 2 }
  0x24   : > { %1754 = vmatprep.mubr.msk.bf16.mxu0 %vm1988_vm1, %v1987_v1  ;;  %v755_v45 = vrot.slane %v753_v41, 1  ;;  %v887_v23 = vrot.slane %v2224_v48, 2 }
  0x25   : > { %v750_v40 = vor.u32 %v749_v37, %v746_v36 }
  0x27   : > { %v751_v43 = vsel %vm716_vm5, %v741_v31, %v750_v40 }
  0x2a   : > { %1769 = vmatmul.mubr.msk.bf16.vlgmr.msra.gmra.mrb[8].mxu1 %vm259_vm3, %v2042_v5  ;;  %v721_v5 = vshll.u32 %v1587_v0, 16 }
  0x2b   : > { %1755 = vmatmul.mubr.msk.bf16.gmra.mrb[8].mxu0 %vm259_vm3, %v242_v47  ;;  %1811 = vmatpush3.bf16.msra.mxu1 %v625_v50  ;;  %v758_v47 = vrot.slane %v756_v42, 2 }
  0x2c   : > { %1790 = vmatprep.mubr.msk.bf16.mxu0 %vm1988_vm1, %v1987_v1  ;;  %1772 = vmatprep.mubr.msk.bf16.mxu1 %vm1988_vm1, %v1987_v1  ;;  %v723_v14 = vrot.slane %v721_v5, 2 }
  0x2d   : > { %1854 = vmatprep.subr.bf16.mxu1 %v1987_v1  ;;  %v759_v50 = vor.u32 %v758_v47, %v755_v45 }
  0x2e   : > { %v724_v19 = vor.u32 %v723_v14, %v720_v13  ;;  %v1034_v13 = vrot.slane %v2275_v9, 2  ;;  %v883_v14 = vrot.slane %v2200_v30, 2 }
  0x2f   : > { %v760_v44 = vsel %vm716_vm5, %v750_v40, %v759_v50  ;;  %v1171_v40 = vshll.u32 %v2275_v9, 16 }
  0x31   : > { %v1173_v47 = vrot.slane %v1171_v40, 3 }
  0x32   : > { %1773 = vmatmul.mubr.msk.bf16.gmra.mrb[12].mxu1 %vm259_vm3, %v2045_v6  ;;  %v726_v6 = vshrl.u32 %v2161_v2, 16 }
  0x33   : > { %1791 = vmatmul.mubr.msk.bf16.vlgmr.msra.gmra.mrb[12].mxu0 %vm259_vm3, %v447_v54  ;;  %1776 = vmatprep.mubr.msk.bf16.mxu1 %vm1988_vm1, %v1987_v1  ;;  %v764_v54 = vrot.slane %v762_v51, 1 }
  0x34   : > { %1833 = vmatpush3.bf16.msra.mxu0 %v786_v55  ;;  %1794 = vmatprep.mubr.msk.bf16.mxu0 %vm1988_vm1, %v1987_v1  ;;  %v728_v15 = vrot.slane %v726_v6, 1  ;;  %v767_v55 = vrot.slane %v765_v52, 2  ;;  %v881_v6 = vrot.slane %v2180_v18, 2 }
  0x35   : > { %1876 = vmatprep.subr.bf16.mxu0 %v1987_v1 }
  0x36   : > { %v732_v20 = vor.u32 %v731_v16, %v728_v15  ;;  %v2289_v16 = vld [vmem:[%s2035_s19 + $0x20] sm:$0xff]  }
  0x37   : > { %v1036_v18 = vrot.slane %v2289_v16, 2  ;;  %v1177_v51 = vshrl.u32 %v2289_v16, 16  ;;  %v1180_v52 = vshll.u32 %v2289_v16, 16 }
  0x38   : > { %v733_v25 = vsel %vm716_vm5, %v724_v19, %v732_v20  ;;  %v742_v35 = vsel %vm716_vm5, %v732_v20, %v741_v31  ;;  %v2302_v20 = vld [vmem:[%s2035_s19 + $0x28] sm:$0xff]  }
  0x39   : > { %v1037_v19 = vsel %vm877_vm6, %v1034_v13, %v1036_v18  ;;  %v1038_v22 = vrot.slane %v2302_v20, 2 }
  0x3a   : > { %1777 = vmatmul.mubr.msk.bf16.gmra.mrb[16].mxu1 %vm259_vm3, %v2057_v12  ;;  %v1605_v12 = vld [vmem:[%s2419_s1 + $0xa] sm:$0x3] }
  0x3b   : > { %1795 = vmatmul.mubr.msk.bf16.gmra.mrb[16].mxu0 %vm259_vm3, %v449_v57  ;;  %1780 = vmatprep.mubr.msk.bf16.mxu1 %vm1988_vm1, %v1987_v1  ;;  %v768_v57 = vor.u32 %v767_v55, %v764_v54  ;;  %v1039_v27 = vsel %vm877_vm6, %v1036_v18, %v1038_v22  ;;  %v1179_v54 = vrot.slane %v1177_v51, 2  ;;  %v1182_v55 = vrot.slane %v1180_v52, 3 }
  0x3c   : > { %1798 = vmatprep.mubr.msk.bf16.mxu0 %vm1988_vm1, %v1987_v1 }
  0x3d   : > { %v769_v62 = vsel %vm716_vm5, %v759_v50, %v768_v57  ;;  %v1183_v57 = vor.u32 %v1182_v55, %v1179_v54 }
  0x42   : > { %1781 = vmatmul.mubr.msk.bf16.gmra.mrb[20].mxu1 %vm259_vm3, %v2051_v10  ;;  %v455_v10 = vsel %vm444_vm4, %v452_v60, %v454_v3  ;;  %v878_v60 = vrot.slane %v1606_v56, 2  ;;  %v1314_v56 = vrot.slane %v2275_v9, 3 }
  0x43   : > { %1799 = vmatmul.mubr.msk.bf16.gmra.mrb[20].mxu0 %vm259_vm3, %v451_v59  ;;  %1784 = vmatprep.mubr.msk.bf16.mxu1 %vm1988_vm1, %v1987_v1  ;;  %v2247_v59 = vld [vmem:[%s2035_s19 + $0xc] sm:$0xf] }
  0x44   : > { %1802 = vmatprep.mubr.msk.bf16.mxu0 %vm1988_vm1, %v1987_v1  ;;  %v1613_v0 = vcombine.low %v990_v58, %v2247_v59  ;;  %v880_v3 = vsel %vm877_vm6, %v878_v60, %v879_v61  ;;  %v1186_v58 = vshrl.u32 %v2302_v20, 16 }
  0x46   : > { %v1031_v2 = vrot.slane %v1613_v0, 2  ;;  %v1154_v24 = vshll.u32 %v1613_v0, 16 }
  0x48   : > { %v1156_v31 = vrot.slane %v1154_v24, 3 }
  0x4a   : > { %1785 = vmatmul.mubr.msk.bf16.gmra.mrb[24].mxu1 %vm259_vm3, %v2054_v11  ;;  %v905_v11 = vsel %vm275_vm0, %v1605_v12, 0  ;;  %v882_v12 = vsel %vm877_vm6, %v879_v61, %v881_v6 }
  0x4b   : > { %1803 = vmatmul.mubr.msk.bf16.gmra.mrb[24].mxu0 %vm259_vm3, %v453_v63  ;;  %1812 = vmatprep.mubr.msk.bf16.mxu1 %vm1988_vm1, %v1987_v1  ;;  %v1624_v63 = vld [vmem:[%s2419_s1 + $0xe] sm:$0x3] }
  0x4c   : > { %1806 = vmatprep.mubr.msk.bf16.mxu0 %vm1988_vm1, %v1987_v1  ;;  %v1219_v4 = vsel %vm275_vm0, %v1624_v63, 0 }
  0x52   : > { %1813 = vmatmul.mubr.msk.bf16.vlgmr.msra.gmra.mrb[28].mxu1 %vm259_vm3, %v600_v17  ;;  %v884_v17 = vsel %vm877_vm6, %v881_v6, %v883_v14 }
  0x53   : > { %1807 = vmatmul.mubr.msk.bf16.gmra.mrb[28].mxu0 %vm259_vm3, %v455_v10  ;;  %1855 = vmatpush3.bf16.msra.mxu1 %v905_v11  ;;  %v1338_v10 = vsel %vm275_vm0, %v1631_v7, 0  ;;  %v885_v11 = vrot.slane %v2090_v39, 2  ;;  %v1151_v39 = vshrl.u32 %v1613_v0, 16  ;;  %v1978_v0 = vld [vmem:[%s2035_s19 + $0x30] ss:$0 sps:$4 sm:$0x77]  }
  0x54   : > { %1834 = vmatprep.mubr.msk.bf16.mxu0 %vm1988_vm1, %v1987_v1  ;;  %1816 = vmatprep.mubr.msk.bf16.mxu1 %vm1988_vm1, %v1987_v1 }
  0x55   : > { %1898 = vmatprep.subr.bf16.mxu1 %v1987_v1  ;;  %v886_v21 = vsel %vm877_vm6, %v883_v14, %v885_v11  ;;  %v1153_v30 = vrot.slane %v1151_v39, 2  ;;  %v1320_v14 = vrot.slane %v1978_v0, 3 }
  0x57   : > { %v1157_v36 = vor.u32 %v1156_v31, %v1153_v30 }
  0x5a   : > { %1817 = vmatmul.mubr.msk.bf16.gmra.mrb[32].mxu1 %vm259_vm3, %v602_v29  ;;  %v888_v29 = vsel %vm877_vm6, %v885_v11, %v887_v23 }
  0x5b   : > { %1835 = vmatmul.mubr.msk.bf16.vlgmr.msra.gmra.mrb[32].mxu0 %vm259_vm3, %v733_v25  ;;  %1820 = vmatprep.mubr.msk.bf16.mxu1 %vm1988_vm1, %v1987_v1 }
  0x5c   : > { %1877 = vmatpush3.bf16.msra.mxu0 %v1058_v28  ;;  %1838 = vmatprep.mubr.msk.bf16.mxu0 %vm1988_vm1, %v1987_v1  ;;  %v1976_v28 = vld [vmem:[%s2035_s19 + $0x30] ss:$0 sps:$4 sm:$0x33]  }
  0x5d   : > { %1920 = vmatprep.subr.bf16.mxu0 %v1987_v1  ;;  %v1040_v34 = vrot.slane %v1976_v28, 2 }
  0x5f   : > { %v1041_v41 = vsel %vm877_vm6, %v1038_v22, %v1040_v34 }
  0x62   : > { %1821 = vmatmul.mubr.msk.bf16.gmra.mrb[36].mxu1 %vm259_vm3, %v604_v38  ;;  %v1168_v38 = vshrl.u32 %v2275_v9, 16  ;;  %v1318_v9 = vrot.slane %v2302_v20, 3 }
  0x63   : > { %1839 = vmatmul.mubr.msk.bf16.gmra.mrb[36].mxu0 %vm259_vm3, %v742_v35  ;;  %1824 = vmatprep.mubr.msk.bf16.mxu1 %vm1988_vm1, %v1987_v1  ;;  %v1304_v35 = vld [vmem:[%s2035_s19 + $0x8] sm:$0x8] }
  0x64   : > { %1842 = vmatprep.mubr.msk.bf16.mxu0 %vm1988_vm1, %v1987_v1  ;;  %v1632_v42 = vcombine.low %v1304_v35, %v2247_v59  ;;  %v1170_v45 = vrot.slane %v1168_v38, 2  ;;  %v1189_v59 = vshll.u32 %v2302_v20, 16 }
  0x66   : > { %v1311_v48 = vrot.slane %v1632_v42, 3  ;;  %v1174_v50 = vor.u32 %v1173_v47, %v1170_v45  ;;  %v1191_v63 = vrot.slane %v1189_v59, 3 }
  0x68   : > { %v1184_v61 = vsel %vm1149_vm7, %v1174_v50, %v1183_v57 }
  0x6a   : > { %1825 = vmatmul.mubr.msk.bf16.gmra.mrb[40].mxu1 %vm259_vm3, %v606_v49 }
  0x6b   : > { %1843 = vmatmul.mubr.msk.bf16.gmra.mrb[40].mxu0 %vm259_vm3, %v751_v43  ;;  %1828 = vmatprep.mubr.msk.bf16.mxu1 %vm1988_vm1, %v1987_v1 }
  0x6c   : > { %1846 = vmatprep.mubr.msk.bf16.mxu0 %vm1988_vm1, %v1987_v1 }
  0x72   : > { %1829 = vmatmul.mubr.msk.bf16.gmra.mrb[44].mxu1 %vm259_vm3, %v2105_v46  ;;  %v2258_v46 = vld [vmem:[%s2035_s19 + $0x10] sm:$0xff]  }
  0x73   : > { %1847 = vmatmul.mubr.msk.bf16.gmra.mrb[44].mxu0 %vm259_vm3, %v760_v44  ;;  %1856 = vmatprep.mubr.msk.bf16.mxu1 %vm1988_vm1, %v1987_v1  ;;  %v1032_v5 = vrot.slane %v2258_v46, 2  ;;  %v1159_v25 = vshrl.u32 %v2258_v46, 16  ;;  %v1162_v26 = vshll.u32 %v2258_v46, 16  ;;  %v1312_v49 = vrot.slane %v2258_v46, 3 }
  0x74   : > { %1850 = vmatprep.mubr.msk.bf16.mxu0 %vm1988_vm1, %v1987_v1  ;;  %v1316_v46 = vrot.slane %v2289_v16, 3 }
  0x75   : > { %v1033_v8 = vsel %vm877_vm6, %v1031_v2, %v1032_v5  ;;  %v1035_v15 = vsel %vm877_vm6, %v1032_v5, %v1034_v13  ;;  %v1161_v32 = vrot.slane %v1159_v25, 2  ;;  %v1164_v33 = vrot.slane %v1162_v26, 3 }
  0x76   : > { %v1313_v53 = vsel %vm1310_vm8, %v1311_v48, %v1312_v49  ;;  %v1315_v60 = vsel %vm1310_vm8, %v1312_v49, %v1314_v56  ;;  %v1198_v2 = vshll.u32 %v1978_v0, 16  ;;  %v1317_v5 = vsel %vm1310_vm8, %v1314_v56, %v1316_v46 }
  0x77   : > { %v1165_v37 = vor.u32 %v1164_v33, %v1161_v32 }
  0x79   : > { %v1166_v43 = vsel %vm1149_vm7, %v1157_v36, %v1165_v37  ;;  %v1175_v44 = vsel %vm1149_vm7, %v1165_v37, %v1174_v50 }
  0x7a   : > { %1857 = vmatmul.mubr.msk.bf16.vlgmr.msra.gmra.mrb[48].mxu1 %vm259_vm3, %v880_v3 }
  0x7b   : > { %1851 = vmatmul.mubr.msk.bf16.gmra.mrb[48].mxu0 %vm259_vm3, %v769_v62  ;;  %1899 = vmatpush3.bf16.msra.mxu1 %v1219_v4  ;;  %v1188_v62 = vrot.slane %v1186_v58, 2  ;;  %v1195_v4 = vshrl.u32 %v1978_v0, 16 }
  0x7c   : > { %1878 = vmatprep.mubr.msk.bf16.mxu0 %vm1988_vm1, %v1987_v1  ;;  %1860 = vmatprep.mubr.msk.bf16.mxu1 %vm1988_vm1, %v1987_v1 }
  0x7d   : > { %v1192_v3 = vor.u32 %v1191_v63, %v1188_v62  ;;  %v1197_v7 = vrot.slane %v1195_v4, 2 }
  0x7f   : > { %v1193_v6 = vsel %vm1149_vm7, %v1183_v57, %v1192_v3 }
  0x82   : > { %1861 = vmatmul.mubr.msk.bf16.gmra.mrb[52].mxu1 %vm259_vm3, %v882_v12  ;;  %v1319_v12 = vsel %vm1310_vm8, %v1316_v46, %v1318_v9 }
  0x83   : > { %1879 = vmatmul.mubr.msk.bf16.vlgmr.msra.gmra.mrb[52].mxu0 %vm259_vm3, %v1033_v8  ;;  %1864 = vmatprep.mubr.msk.bf16.mxu1 %vm1988_vm1, %v1987_v1  ;;  %v1200_v8 = vrot.slane %v1198_v2, 3 }
  0x84   : > { %1921 = vmatpush3.bf16.msra.mxu0 %v1338_v10  ;;  %1882 = vmatprep.mubr.msk.bf16.mxu0 %vm1988_vm1, %v1987_v1 }
  0x85   : > { %v1201_v10 = vor.u32 %v1200_v8, %v1197_v7 }
  0x87   : > { %v1202_v13 = vsel %vm1149_vm7, %v1192_v3, %v1201_v10 }
  0x8a   : > { %1865 = vmatmul.mubr.msk.bf16.gmra.mrb[56].mxu1 %vm259_vm3, %v884_v17 }
  0x8b   : > { %1883 = vmatmul.mubr.msk.bf16.gmra.mrb[56].mxu0 %vm259_vm3, %v1035_v15  ;;  %1868 = vmatprep.mubr.msk.bf16.mxu1 %vm1988_vm1, %v1987_v1  ;;  %v1321_v15 = vsel %vm1310_vm8, %v1318_v9, %v1320_v14 }
  0x8c   : > { %1886 = vmatprep.mubr.msk.bf16.mxu0 %vm1988_vm1, %v1987_v1 }
  0x92   : > { %1869 = vmatmul.mubr.msk.bf16.gmra.mrb[60].mxu1 %vm259_vm3, %v886_v21 }
  0x93   : > { %1887 = vmatmul.mubr.msk.bf16.gmra.mrb[60].mxu0 %vm259_vm3, %v1037_v19  ;;  %1872 = vmatprep.mubr.msk.bf16.mxu1 %vm1988_vm1, %v1987_v1 }
  0x94   : > { %1890 = vmatprep.mubr.msk.bf16.mxu0 %vm1988_vm1, %v1987_v1 }
  0x9a   : > { %1873 = vmatmul.mubr.msk.bf16.gmra.mrb[64].mxu1 %vm259_vm3, %v888_v29 }
  0x9b   : > { %1891 = vmatmul.mubr.msk.bf16.gmra.mrb[64].mxu0 %vm259_vm3, %v1039_v27  ;;  %1900 = vmatprep.mubr.msk.bf16.mxu1 %vm1988_vm1, %v1987_v1 }
  0x9c   : > { %1894 = vmatprep.mubr.msk.bf16.mxu0 %vm1988_vm1, %v1987_v1 }
  0xa2   : > { %1901 = vmatmul.mubr.msk.bf16.vlgmr.msra.gmra.mrb[68].mxu1 %vm259_vm3, %v1166_v43 }
  0xa3   : > { %1895 = vmatmul.mubr.msk.bf16.gmra.mrb[68].mxu0 %vm259_vm3, %v1041_v41  ;;  %1904 = vmatprep.mubr.msk.bf16.mxu1 %vm1988_vm1, %v1987_v1 }
  0xa4   : > { %1922 = vmatprep.mubr.msk.bf16.mxu0 %vm1988_vm1, %v1987_v1 }
  0xaa   : > { %1905 = vmatmul.mubr.msk.bf16.gmra.mrb[72].mxu1 %vm259_vm3, %v1175_v44 }
  0xab   : > { %1923 = vmatmul.mubr.msk.bf16.vlgmr.msra.gmra.mrb[72].mxu0 %vm259_vm3, %v1313_v53  ;;  %1908 = vmatprep.mubr.msk.bf16.mxu1 %vm1988_vm1, %v1987_v1 }
  0xac   : > { %1926 = vmatprep.mubr.msk.bf16.mxu0 %vm1988_vm1, %v1987_v1 }
  0xb2   : > { %1909 = vmatmul.mubr.msk.bf16.gmra.mrb[76].mxu1 %vm259_vm3, %v1184_v61 }
  0xb3   : > { %1927 = vmatmul.mubr.msk.bf16.gmra.mrb[76].mxu0 %vm259_vm3, %v1315_v60  ;;  %1912 = vmatprep.mubr.msk.bf16.mxu1 %vm1988_vm1, %v1987_v1 }
  0xb4   : > { %1930 = vmatprep.mubr.msk.bf16.mxu0 %vm1988_vm1, %v1987_v1 }
  0xba   : > { %1913 = vmatmul.mubr.msk.bf16.gmra.mrb[80].mxu1 %vm259_vm3, %v1193_v6 }
  0xbb   : > { %1931 = vmatmul.mubr.msk.bf16.gmra.mrb[80].mxu0 %vm259_vm3, %v1317_v5  ;;  %1916 = vmatprep.mubr.msk.bf16.mxu1 %vm1988_vm1, %v1987_v1 }
  0xbc   : > { %1934 = vmatprep.mubr.msk.bf16.mxu0 %vm1988_vm1, %v1987_v1 }
  0xc2   : > { %1917 = vmatmul.mubr.msk.bf16.gmra.mrb[84].mxu1 %vm259_vm3, %v1202_v13 }
  0xc3   : > { %1935 = vmatmul.mubr.msk.bf16.gmra.mrb[84].mxu0 %vm259_vm3, %v1319_v12 }
  0xc4   : > { %1938 = vmatprep.mubr.msk.bf16.mxu0 %vm1988_vm1, %v1987_v1 }
  0xcb   : > { %1939 = vmatmul.mubr.msk.bf16.gmra.mrb[88].mxu0 %vm259_vm3, %v1321_v15 }
  0xed   : > { %v337_v11 = vpop.f32.mrb[0].mxu1 }
  0xee   : > { %v313_v16 = vpop.f32.mrb[0].mxu0  ;;  %v1760_v20 = vpop.f32.mrb[1].mxu1 }
  0xef   : > { %v1748_v17 = vpop.f32.mrb[1].mxu0  ;;  %v340_v21 = vpop.f32.mrb[2].mxu1 }
  0xf0   : > { %v316_v18 = vpop.f32.mrb[2].mxu0  ;;  %v1761_v22 = vpop.f32.mrb[3].mxu1 }
  0xf1   : > { %v1749_v19 = vpop.f32.mrb[3].mxu0 }
  0xf5   : > { %v345_v25 = vpop.f32.mrb[4].mxu1 }
  0xf6   : > { %v321_v23 = vpop.f32.mrb[4].mxu0  ;;  %v1764_v26 = vpop.f32.mrb[5].mxu1 }
  0xf7   : > { %v1752_v39 = vpop.f32.mrb[5].mxu0  ;;  %v348_v27 = vpop.f32.mrb[6].mxu1 }
  0xf8   : > { %v324_v24 = vpop.f32.mrb[6].mxu0  ;;  %v1765_v28 = vpop.f32.mrb[7].mxu1 }
  0xf9   : > { %v1753_v1 = vpop.f32.mrb[7].mxu0 }
  0xfd   : > { %v399_v31 = vpop.f32.mrb[8].mxu1 }
  0xfe   : > { %v329_v29 = vpop.f32.mrb[8].mxu0  ;;  %v400_v33 = vadd.f32 %v399_v31, %v313_v16  ;;  %v1770_v34 = vpop.f32.mrb[9].mxu1 }
  0xff   : > { %v1756_v30 = vpop.f32.mrb[9].mxu0  ;;  %v402_v36 = vpop.f32.mrb[10].mxu1 }
 0x100   : > { %v332_v32 = vpop.f32.mrb[10].mxu0  ;;  %v403_v37 = vadd.f32 %v402_v36, %v316_v18  ;;  %v1771_v38 = vpop.f32.mrb[11].mxu1 }
 0x101   : > { %v1757_v35 = vpop.f32.mrb[11].mxu0 }
 0x105   : > { %v407_v43 = vpop.f32.mrb[12].mxu1 }
 0x106   : > { %v508_v40 = vpop.f32.mrb[12].mxu0  ;;  %v408_v47 = vadd.f32 %v407_v43, %v321_v23  ;;  %v1774_v48 = vpop.f32.mrb[13].mxu1 }
 0x107   : > { %v547_v41 = vadd.f32 %v508_v40, %v400_v33  ;;  %v1792_v42 = vpop.f32.mrb[13].mxu0  ;;  %v410_v51 = vpop.f32.mrb[14].mxu1 }
 0x108   : > { %v511_v45 = vpop.f32.mrb[14].mxu0  ;;  %v411_v52 = vadd.f32 %v410_v51, %v324_v24  ;;  %v1775_v53 = vpop.f32.mrb[15].mxu1 }
 0x109   : > { %v548_v49 = vadd.f32 %v511_v45, %v403_v37  ;;  %v1793_v50 = vpop.f32.mrb[15].mxu0 }
 0x10d   : > { %v415_v56 = vpop.f32.mrb[16].mxu1 }
 0x10e   : > { %v516_v44 = vpop.f32.mrb[16].mxu0  ;;  %v416_v58 = vadd.f32 %v415_v56, %v329_v29  ;;  %v1778_v59 = vpop.f32.mrb[17].mxu1 }
 0x10f   : > { %v549_v54 = vadd.f32 %v516_v44, %v408_v47  ;;  %v1796_v55 = vpop.f32.mrb[17].mxu0  ;;  %v418_v62 = vpop.f32.mrb[18].mxu1 }
 0x110   : > { %v519_v57 = vpop.f32.mrb[18].mxu0  ;;  %v419_v63 = vadd.f32 %v418_v62, %v332_v32  ;;  %v1779_v0 = vpop.f32.mrb[19].mxu1 }
 0x111   : > { %v550_v60 = vadd.f32 %v519_v57, %v411_v52  ;;  %v1797_v61 = vpop.f32.mrb[19].mxu0 }
 0x115   : > { %v423_v2 = vpop.f32.mrb[20].mxu1 }
 0x116   : > { %v524_v46 = vpop.f32.mrb[20].mxu0  ;;  %v424_v6 = vadd.f32 %v423_v2, %v337_v11  ;;  %v1782_v7 = vpop.f32.mrb[21].mxu1 }
 0x117   : > { %v551_v3 = vadd.f32 %v524_v46, %v416_v58  ;;  %v1800_v4 = vpop.f32.mrb[21].mxu0  ;;  %v426_v10 = vpop.f32.mrb[22].mxu1 }
 0x118   : > { %v527_v5 = vpop.f32.mrb[22].mxu0  ;;  %v427_v12 = vadd.f32 %v426_v10, %v340_v21  ;;  %v1783_v13 = vpop.f32.mrb[23].mxu1 }
 0x119   : > { %v552_v8 = vadd.f32 %v527_v5, %v419_v63  ;;  %v1801_v9 = vpop.f32.mrb[23].mxu0 }
 0x11d   : > { %v431_v17 = vpop.f32.mrb[24].mxu1 }
 0x11e   : > { %v532_v14 = vpop.f32.mrb[24].mxu0  ;;  %v432_v19 = vadd.f32 %v431_v17, %v345_v25  ;;  %v1786_v20 = vpop.f32.mrb[25].mxu1 }
 0x11f   : > { %v553_v15 = vadd.f32 %v532_v14, %v424_v6  ;;  %v1804_v16 = vpop.f32.mrb[25].mxu0  ;;  %v434_v39 = vpop.f32.mrb[26].mxu1 }
 0x120   : > { %v535_v18 = vpop.f32.mrb[26].mxu0  ;;  %v435_v24 = vadd.f32 %v434_v39, %v348_v27  ;;  %v1787_v1 = vpop.f32.mrb[27].mxu1 }
 0x121   : > { %v554_v22 = vadd.f32 %v535_v18, %v427_v12  ;;  %v1805_v23 = vpop.f32.mrb[27].mxu0 }
 0x125   : > { %v661_v29 = vpop.f32.mrb[28].mxu1 }
 0x126   : > { %v540_v26 = vpop.f32.mrb[28].mxu0  ;;  %v700_v31 = vadd.f32 %v661_v29, %v547_v41  ;;  %v1814_v21 = vpop.f32.mrb[29].mxu1 }
 0x127   : > { %v555_v11 = vadd.f32 %v540_v26, %v432_v19  ;;  %v1808_v28 = vpop.f32.mrb[29].mxu0  ;;  %v664_v34 = vpop.f32.mrb[30].mxu1 }
 0x128   : > { %v543_v30 = vpop.f32.mrb[30].mxu0  ;;  %v701_v35 = vadd.f32 %v664_v34, %v548_v49  ;;  %v1815_v36 = vpop.f32.mrb[31].mxu1 }
 0x129   : > { %v556_v32 = vadd.f32 %v543_v30, %v435_v24  ;;  %v1809_v33 = vpop.f32.mrb[31].mxu0 }
 0x12d   : > { %v669_v40 = vpop.f32.mrb[32].mxu1 }
 0x12e   : > { %v822_v37 = vpop.f32.mrb[32].mxu0  ;;  %v702_v43 = vadd.f32 %v669_v40, %v549_v54  ;;  %v1818_v27 = vpop.f32.mrb[33].mxu1 }
 0x12f   : > { %v861_v25 = vadd.f32 %v822_v37, %v700_v31  ;;  %v1836_v38 = vpop.f32.mrb[33].mxu0  ;;  %v672_v48 = vpop.f32.mrb[34].mxu1 }
 0x130   : > { %v825_v42 = vpop.f32.mrb[34].mxu0  ;;  %v703_v50 = vadd.f32 %v672_v48, %v550_v60  ;;  %v1819_v51 = vpop.f32.mrb[35].mxu1 }
 0x131   : > { %v862_v45 = vadd.f32 %v825_v42, %v701_v35  ;;  %v1837_v47 = vpop.f32.mrb[35].mxu0 }
 0x135   : > { %v677_v44 = vpop.f32.mrb[36].mxu1 }
 0x136   : > { %v830_v52 = vpop.f32.mrb[36].mxu0  ;;  %v704_v56 = vadd.f32 %v677_v44, %v551_v3  ;;  %v1822_v49 = vpop.f32.mrb[37].mxu1 }
 0x137   : > { %v863_v41 = vadd.f32 %v830_v52, %v702_v43  ;;  %v1840_v53 = vpop.f32.mrb[37].mxu0  ;;  %v680_v59 = vpop.f32.mrb[38].mxu1 }
 0x138   : > { %v833_v55 = vpop.f32.mrb[38].mxu0  ;;  %v705_v61 = vadd.f32 %v680_v59, %v552_v8  ;;  %v1823_v62 = vpop.f32.mrb[39].mxu1 }
 0x139   : > { %v864_v57 = vadd.f32 %v833_v55, %v703_v50  ;;  %v1841_v58 = vpop.f32.mrb[39].mxu0 }
 0x13d   : > { %v685_v46 = vpop.f32.mrb[40].mxu1 }
 0x13e   : > { %v838_v63 = vpop.f32.mrb[40].mxu0  ;;  %v706_v2 = vadd.f32 %v685_v46, %v553_v15  ;;  %v1826_v60 = vpop.f32.mrb[41].mxu1 }
 0x13f   : > { %v865_v54 = vadd.f32 %v838_v63, %v704_v56  ;;  %v1844_v0 = vpop.f32.mrb[41].mxu0  ;;  %v688_v7 = vpop.f32.mrb[42].mxu1 }
 0x140   : > { %v841_v4 = vpop.f32.mrb[42].mxu0  ;;  %v707_v9 = vadd.f32 %v688_v7, %v554_v22  ;;  %v1827_v10 = vpop.f32.mrb[43].mxu1 }
 0x141   : > { %v866_v5 = vadd.f32 %v841_v4, %v705_v61  ;;  %v1845_v6 = vpop.f32.mrb[43].mxu0 }
 0x145   : > { %v693_v14 = vpop.f32.mrb[44].mxu1 }
 0x146   : > { %v846_v12 = vpop.f32.mrb[44].mxu0  ;;  %v708_v17 = vadd.f32 %v693_v14, %v555_v11  ;;  %v1830_v8 = vpop.f32.mrb[45].mxu1 }
 0x147   : > { %v867_v3 = vadd.f32 %v846_v12, %v706_v2  ;;  %v1848_v13 = vpop.f32.mrb[45].mxu0  ;;  %v696_v20 = vpop.f32.mrb[46].mxu1 }
 0x148   : > { %v849_v16 = vpop.f32.mrb[46].mxu0  ;;  %v709_v23 = vadd.f32 %v696_v20, %v556_v32  ;;  %v1831_v39 = vpop.f32.mrb[47].mxu1 }
 0x149   : > { %v868_v18 = vadd.f32 %v849_v16, %v707_v9  ;;  %v1849_v19 = vpop.f32.mrb[47].mxu0 }
 0x14d   : > { %v941_v26 = vpop.f32.mrb[48].mxu1 }
 0x14e   : > { %v854_v24 = vpop.f32.mrb[48].mxu0  ;;  %v980_v29 = vadd.f32 %v941_v26, %v861_v25  ;;  %v1858_v22 = vpop.f32.mrb[49].mxu1 }
 0x14f   : > { %v869_v15 = vadd.f32 %v854_v24, %v708_v17  ;;  %v1852_v1 = vpop.f32.mrb[49].mxu0  ;;  %v944_v21 = vpop.f32.mrb[50].mxu1 }
 0x150   : > { %v857_v28 = vpop.f32.mrb[50].mxu0  ;;  %v981_v33 = vadd.f32 %v944_v21, %v862_v45  ;;  %v1859_v34 = vpop.f32.mrb[51].mxu1 }
 0x151   : > { %v870_v30 = vadd.f32 %v857_v28, %v709_v23  ;;  %v1853_v31 = vpop.f32.mrb[51].mxu0 }
 0x155   : > { %v949_v37 = vpop.f32.mrb[52].mxu1 }
 0x156   : > { %v1094_v35 = vpop.f32.mrb[52].mxu0  ;;  %v982_v40 = vadd.f32 %v949_v37, %v863_v41  ;;  %v1862_v32 = vpop.f32.mrb[53].mxu1 }
 0x157   : > { %v1133_v11 = vadd.f32 %v1094_v35, %v980_v29  ;;  %v1880_v36 = vpop.f32.mrb[53].mxu0  ;;  %v952_v27 = vpop.f32.mrb[54].mxu1 }
 0x158   : > { %v1097_v38 = vpop.f32.mrb[54].mxu0  ;;  %v983_v47 = vadd.f32 %v952_v27, %v864_v57  ;;  %v1863_v48 = vpop.f32.mrb[55].mxu1 }
 0x159   : > { %v1134_v42 = vadd.f32 %v1097_v38, %v981_v33  ;;  %v1881_v43 = vpop.f32.mrb[55].mxu0 }
 0x15d   : > { %v957_v52 = vpop.f32.mrb[56].mxu1 }
 0x15e   : > { %v1102_v50 = vpop.f32.mrb[56].mxu0  ;;  %v984_v44 = vadd.f32 %v957_v52, %v865_v54  ;;  %v1866_v45 = vpop.f32.mrb[57].mxu1 }
 0x15f   : > { %v1135_v25 = vadd.f32 %v1102_v50, %v982_v40  ;;  %v1884_v51 = vpop.f32.mrb[57].mxu0  ;;  %v960_v49 = vpop.f32.mrb[58].mxu1 }
 0x160   : > { %v1105_v53 = vpop.f32.mrb[58].mxu0  ;;  %v985_v58 = vadd.f32 %v960_v49, %v866_v5  ;;  %v1867_v59 = vpop.f32.mrb[59].mxu1 }
 0x161   : > { %v1136_v55 = vadd.f32 %v1105_v53, %v983_v47  ;;  %v1885_v56 = vpop.f32.mrb[59].mxu0 }
 0x165   : > { %v965_v63 = vpop.f32.mrb[60].mxu1 }
 0x166   : > { %v1110_v61 = vpop.f32.mrb[60].mxu0  ;;  %v986_v46 = vadd.f32 %v965_v63, %v867_v3  ;;  %v1870_v57 = vpop.f32.mrb[61].mxu1 }
 0x167   : > { %v1137_v41 = vadd.f32 %v1110_v61, %v984_v44  ;;  %v1888_v62 = vpop.f32.mrb[61].mxu0  ;;  %v968_v60 = vpop.f32.mrb[62].mxu1 }
 0x168   : > { %v1113_v0 = vpop.f32.mrb[62].mxu0  ;;  %v987_v6 = vadd.f32 %v968_v60, %v868_v18  ;;  %v1871_v7 = vpop.f32.mrb[63].mxu1 }
 0x169   : > { %v1138_v4 = vadd.f32 %v1113_v0, %v985_v58  ;;  %v1889_v2 = vpop.f32.mrb[63].mxu0 }
 0x16d   : > { %v973_v12 = vpop.f32.mrb[64].mxu1 }
 0x16e   : > { %v1118_v9 = vpop.f32.mrb[64].mxu0  ;;  %v988_v5 = vadd.f32 %v973_v12, %v869_v15  ;;  %v1874_v14 = vpop.f32.mrb[65].mxu1 }
 0x16f   : > { %v2377_v54 = vadd.f32 %v1118_v9, %v986_v46  ;;  %v1892_v10 = vpop.f32.mrb[65].mxu0  ;;  %v976_v8 = vpop.f32.mrb[66].mxu1 }
 0x170   : > { %v1121_v13 = vpop.f32.mrb[66].mxu0  ;;  %v989_v19 = vadd.f32 %v976_v8, %v870_v30  ;;  %v1875_v3 = vpop.f32.mrb[67].mxu1  ;;  %v2388_v30 = vld [vmem:[%s2420_s2] ss:$0 sm:$0xff] }
 0x171   : > { %v2379_v16 = vadd.f32 %v1121_v13, %v987_v6  ;;  %v1893_v17 = vpop.f32.mrb[67].mxu0 }
 0x175   : > { %v1255_v18 = vpop.f32.mrb[68].mxu1 }
 0x176   : > { %v1126_v20 = vpop.f32.mrb[68].mxu0  ;;  %v1294_v1 = vadd.f32 %v1255_v18, %v1133_v11  ;;  %v1902_v26 = vpop.f32.mrb[69].mxu1 }
 0x177   : > { %v2381_v23 = vadd.f32 %v1126_v20, %v988_v5  ;;  %v1896_v39 = vpop.f32.mrb[69].mxu0  ;;  %v1258_v15 = vpop.f32.mrb[70].mxu1 }
 0x178   : > { %v1129_v24 = vpop.f32.mrb[70].mxu0  ;;  %v1295_v22 = vadd.f32 %v1258_v15, %v1134_v42  ;;  %v1903_v31 = vpop.f32.mrb[71].mxu1 }
 0x179   : > { %v2383_v28 = vadd.f32 %v1129_v24, %v989_v19  ;;  %v1897_v29 = vpop.f32.mrb[71].mxu0 }
 0x17d   : > { %v1263_v35 = vpop.f32.mrb[72].mxu1 }
 0x17e   : > { %v1374_v21 = vpop.f32.mrb[72].mxu0  ;;  %v1296_v37 = vadd.f32 %v1263_v35, %v1135_v25  ;;  %v1906_v38 = vpop.f32.mrb[73].mxu1 }
 0x17f   : > { %v1413_v33 = vadd.f32 %v1374_v21, %v1294_v1  ;;  %v1924_v34 = vpop.f32.mrb[73].mxu0  ;;  %v1266_v43 = vpop.f32.mrb[74].mxu1 }
 0x180   : > { %v1377_v36 = vpop.f32.mrb[74].mxu0  ;;  %v1297_v42 = vadd.f32 %v1266_v43, %v1136_v55  ;;  %v1907_v47 = vpop.f32.mrb[75].mxu1 }
 0x181   : > { %v1430_v11 = vadd.f32 %v2388_v30, %v1413_v33  ;;  %v1414_v40 = vadd.f32 %v1377_v36, %v1295_v22  ;;  %v1925_v32 = vpop.f32.mrb[75].mxu0 }
 0x183   : > { %v1431_v27 = vadd.f32 %v2388_v30, %v1414_v40  ;;  %v1440_v48 = vmax.f32 %v1430_v11, 0.0 }
 0x185   : > { %v1441_v50 = vmax.f32 %v1431_v27, 0.0  ;;  %v1271_v44 = vpop.f32.mrb[76].mxu1 }
 0x186   : > { %v1382_v25 = vpop.f32.mrb[76].mxu0  ;;  %v1298_v56 = vadd.f32 %v1271_v44, %v1137_v41  ;;  %v1910_v49 = vpop.f32.mrb[77].mxu1 }
 0x187   : > { %v1664_v51 = vpack.c.bf16 %v1441_v50, %v1440_v48  ;;  %v1415_v52 = vadd.f32 %v1382_v25, %v1296_v37  ;;  %v1928_v53 = vpop.f32.mrb[77].mxu0  ;;  %v1274_v61 = vpop.f32.mrb[78].mxu1 }
 0x188   : > { %v1385_v45 = vpop.f32.mrb[78].mxu0  ;;  %v1299_v62 = vadd.f32 %v1274_v61, %v1138_v4  ;;  %v1911_v0 = vpop.f32.mrb[79].mxu1 }
 0x189   : > { %1665 = vst [vmem:[%s2396_s16] sm:$0xff] %v1664_v51   ;;  %v1432_v55 = vadd.f32 %v2388_v30, %v1415_v52  ;;  %v1416_v58 = vadd.f32 %v1385_v45, %v1297_v42  ;;  %v1929_v59 = vpop.f32.mrb[79].mxu0 }
 0x18b   : > { %v1433_v63 = vadd.f32 %v2388_v30, %v1416_v58  ;;  %v1442_v46 = vmax.f32 %v1432_v55, 0.0 }
 0x18d   : > { %v1443_v57 = vmax.f32 %v1433_v63, 0.0  ;;  %v1279_v9 = vpop.f32.mrb[80].mxu1 }
 0x18e   : > { %v1390_v2 = vpop.f32.mrb[80].mxu0  ;;  %v1300_v41 = vadd.f32 %v1279_v9, %v2377_v54  ;;  %v1914_v13 = vpop.f32.mrb[81].mxu1 }
 0x18f   : > { %v1669_v60 = vpack.c.bf16 %v1443_v57, %v1442_v46  ;;  %v1417_v6 = vadd.f32 %v1390_v2, %v1298_v56  ;;  %v1932_v7 = vpop.f32.mrb[81].mxu0  ;;  %v1282_v14 = vpop.f32.mrb[82].mxu1 }
 0x190   : > { %v1393_v10 = vpop.f32.mrb[82].mxu0  ;;  %v1301_v17 = vadd.f32 %v1282_v14, %v2379_v16  ;;  %v1915_v19 = vpop.f32.mrb[83].mxu1 }
 0x191   : > { %1686 = vst [vmem:[%s2396_s16 + $0x8] sm:$0xff] %v1669_v60   ;;  %v1434_v12 = vadd.f32 %v2388_v30, %v1417_v6  ;;  %v1418_v5 = vadd.f32 %v1393_v10, %v1299_v62  ;;  %v1933_v4 = vpop.f32.mrb[83].mxu0 }
 0x193   : > { %v1435_v8 = vadd.f32 %v2388_v30, %v1418_v5  ;;  %v1444_v3 = vmax.f32 %v1434_v12, 0.0 }
 0x195   : > { %v1445_v20 = vmax.f32 %v1435_v8, 0.0  ;;  %v1287_v26 = vpop.f32.mrb[84].mxu1 }
 0x196   : > { %v1398_v39 = vpop.f32.mrb[84].mxu0  ;;  %v1302_v29 = vadd.f32 %v1287_v26, %v2381_v23  ;;  %v1918_v22 = vpop.f32.mrb[85].mxu1 }
 0x197   : > { %v1674_v18 = vpack.c.bf16 %v1445_v20, %v1444_v3  ;;  %v1419_v24 = vadd.f32 %v1398_v39, %v1300_v41  ;;  %v1936_v1 = vpop.f32.mrb[85].mxu0  ;;  %v1290_v21 = vpop.f32.mrb[86].mxu1 }
 0x198   : > { %v1401_v54 = vpop.f32.mrb[86].mxu0  ;;  %v1303_v33 = vadd.f32 %v1290_v21, %v2383_v28  ;;  %v1919_v35 = vpop.f32.mrb[87].mxu1 }
 0x199   : > { %1687 = vst [vmem:[%s2396_s16 + $0x10] sm:$0xff] %v1674_v18   ;;  %v1436_v15 = vadd.f32 %v2388_v30, %v1419_v24  ;;  %v1420_v31 = vadd.f32 %v1401_v54, %v1301_v17  ;;  %v1937_v16 = vpop.f32.mrb[87].mxu0 }
 0x19b   : > { %v1437_v34 = vadd.f32 %v2388_v30, %v1420_v31  ;;  %v1446_v36 = vmax.f32 %v1436_v15, 0.0 }
 0x19d   : > { %v1447_v37 = vmax.f32 %v1437_v34, 0.0 }
 0x19e   : > { %v1406_v11 = vpop.f32.mrb[88].mxu0 }
 0x19f   : > { %v1679_v38 = vpack.c.bf16 %v1447_v37, %v1446_v36  ;;  %v1421_v40 = vadd.f32 %v1406_v11, %v1302_v29  ;;  %v1940_v32 = vpop.f32.mrb[89].mxu0 }
 0x1a0   : > { %v1409_v23 = vpop.f32.mrb[90].mxu0 }
 0x1a1   : > { %1688 = vst [vmem:[%s2396_s16 + $0x18] sm:$0xff] %v1679_v38   ;;  %v1438_v43 = vadd.f32 %v2388_v30, %v1421_v40  ;;  %v1422_v42 = vadd.f32 %v1409_v23, %v1303_v33  ;;  %v1941_v27 = vpop.f32.mrb[91].mxu0 }
 0x1a3   : > { %v1439_v47 = vadd.f32 %v2388_v30, %v1422_v42  ;;  %v1448_v48 = vmax.f32 %v1438_v43, 0.0 }
 0x1a5   : > { %v1449_v28 = vmax.f32 %v1439_v47, 0.0 }
 0x1a7   : > { %v1684_v50 = vpack.c.bf16 %v1449_v28, %v1448_v48 }
 0x1a9   : > { %1689 = vst [vmem:[%s2396_s16 + $0x20] sm:$0xff] %v1684_v50  }
 0x1aa PF: > { %s13_s12 = sadd.s32 1, %s1985_s12  }
 0x1ab   : > { %p10_p4 = scmp.ge.s32.totalorder %s13_s12, 8  }
 0x1ad   :  { %12 = sbr.rel (!%p10_p4) target bundleno = 1 (0x1), region = 70 }

// kernel: basicblock3d_forward.3
= control target key start
LH: loop header
LB: loop body
LE: loop exit
PB: predicated region body
PF: predicated region fallthrough
CT: control target
= control target key end

     0   :  { %s2040_s15 = smov 0   ;;  %s2471_s0 = inlined_call_operand.vmem [shape: bf16[6,120,4], index: 0, kind: input, shape index: {}]   ;;  %s2472_s1 = inlined_call_operand.vmem [shape: bf16[9,4,128], index: 1, kind: input, shape index: {}]   ;;  %s2473_s2 = inlined_call_operand.vmem [shape: f32[1,128], index: 2, kind: input, shape index: {}]   ;;  %s2474_s3 = inlined_call_operand.vmem [shape: bf16[6,80,128], index: 3, kind: input, shape index: {}]   ;;  %s2475_s4 = inlined_call_operand.vmem [shape: f32[6,80,128], index: 4, kind: output, shape index: {}]  }
   0x1 LB: > { %s1604_s16 = sadd.s32 4294967295, %s2011_s15   ;;  %p1608_p0 = scmp.ge.s32.totalorder %s2011_s15, 1  ;;  %s2011_s15 = sphi %s2040_s15, %s14_s15  }
   0x2   : > { %p172_p1 = scmp.lt.s32.totalorder %s2011_s15, 7 }
   0x4   : > { %p173_p2 = pnand %p1608_p0, %p172_p1 }
   0x5   : > { %v1612_v0 = vld [vmem:[%s2472_s1 + $0x2] sm:$0x3] (!%p173_p2)  ;;  %vm322_vm0 = vcmask (!%p173_p2), 1041408   ;;  %p203_p3 = scmp.lt.s32.totalorder (!%p173_p2), %s1604_s16, 5  ;;  %v2013_v1 = vmov (!%p173_p2), 0.0   ;;  %vm2014_vm1 = vmmov (!%p173_p2), 0  }
   0x6   : > { %176 = sbr.rel (%p173_p2) target bundleno = 426 (0x1aa), region = 36  ;;  %1769 = vmatprep.subr.bf16.mxu0 (!%p173_p2), %v2013_v1  ;;  %1967 = vmatprep.subr.bf16.mxu1 (!%p173_p2), %v2013_v1  ;;  %v324_v2 = vsel (!%p173_p2), %vm322_vm0, %v1612_v0, 0  ;;  %vm261_vm2 = vsmask.f32 (!%p173_p2), 7424  ;;  %v1629_v13 = vld [vmem:[%s2472_s1 + $0x4] sm:$0x3] (!%p173_p2) }
   0x7   : > { %1770 = vmatpush3.bf16.msra.mxu0 (!%p173_p2), %v324_v2  ;;  %1968 = vmatpush3.bf16.msra.mxu1 (!%p173_p2), %v324_v2  ;;  %vm306_vm3 = vcmask (!%p173_p2), 31744   ;;  %v229_v22 = vld [vmem:[%s2472_s1] sm:$0x3] (!%p173_p2)  ;;  %v519_v26 = vsel (!%p173_p2), %vm322_vm0, %v1629_v13, 0  ;;  %vm491_vm4 = vcmask (!%p173_p2), 1046528   ;;  %vm924_vm6 = vcmask (!%p173_p2), 1045504  }
   0x8   : > { %1771 = vmatprep.mubr.msk.bf16.mxu0 (!%p173_p2), %vm2014_vm1, %v2013_v1  ;;  %1783 = vmatprep.mubr.msk.bf16.mxu1 (!%p173_p2), %vm2014_vm1, %v2013_v1  ;;  %v410_v31 = vsel (!%p173_p2), %vm322_vm0, %v229_v22, 0  ;;  %v1636_v48 = vld [vmem:[%s2472_s1 + $0x6] sm:$0x3] (!%p173_p2)  ;;  %v1648_v53 = vld [vmem:[%s2472_s1 + $0x8] sm:$0x3] (!%p173_p2)  ;;  %vm1357_vm8 = vcmask (!%p173_p2), 1044480  }
   0x9   : > { %1813 = vmatprep.subr.bf16.mxu0 (!%p173_p2), %v2013_v1  ;;  %1791 = vmatprep.subr.bf16.mxu1 (!%p173_p2), %v2013_v1  ;;  %v672_v50 = vsel (!%p173_p2), %vm322_vm0, %v1636_v48, 0  ;;  %v833_v55 = vsel (!%p173_p2), %vm322_vm0, %v1648_v53, 0  ;;  %vm763_vm5 = vsmask.f32 (!%p173_p2), 6400  ;;  %vm1196_vm7 = vsmask.f32 (!%p173_p2), 5376 }
   0xd   : > { %s2477_s16 = smov (!%p203_p3, %s1604_s16), 5 }
   0xe   : > { %s1969_s19 = smul.u32 60, %s2477_s16 }
   0xf   : > { %s1970_s13 = smul.u32 40, %s2477_s16 }
  0x10   : > { %s2066_s22 = scalar_lea.vmem %s2471_s0, %s1969_s19  ;;  %s1971_s21 = smul.u32 80, %s2477_s16 }
  0x11   : > { %v219_v3 = vld [vmem:[%s2066_s22] sm:$0xf]  ;;  %v2070_v4 = vld [vmem:[%s2066_s22 + $0x4] sm:$0xf]  ;;  %v2076_v6 = vld [vmem:[%s2066_s22 + $0x8] sm:$0xff]   ;;  %s2424_s18 = scalar_lea.vmem %s2474_s3, %s1970_s13 }
  0x12   : > { %v2073_v5 = vcombine.low %v219_v3, %v2070_v4  ;;  %v270_v9 = vshll.u32 %v2076_v6, 16  ;;  %v2082_v10 = vld [vmem:[%s2066_s22 + $0x18] sm:$0xff]   ;;  %v2085_v11 = vld [vmem:[%s2066_s22 + $0x20] sm:$0xff]   ;;  %v2088_v12 = vld [vmem:[%s2066_s22 + $0x10] sm:$0xff]   ;;  %v274_v23 = vshrl.u32 %v2076_v6, 16  ;;  %v493_v52 = vrot.slane %v2076_v6, 1  ;;  %s2438_s24 = scalar_lea.vmem %s2475_s4, %s1971_s21 }
  0x13   : > { %v286_v16 = vshll.u32 %v2082_v10, 16  ;;  %v290_v17 = vshrl.u32 %v2082_v10, 16  ;;  %v294_v18 = vshll.u32 %v2085_v11, 16  ;;  %v2097_v19 = vld [vmem:[%s2066_s22 + $0x28] ss:$0 sps:$4 sm:$0x11]  }
  0x14   : > { %v263_v7 = vshrl.u32 %v2073_v5, 16  ;;  %v265_v8 = vshll.u32 %v2073_v5, 16  ;;  %v272_v15 = vrot.slane %v270_v9, 1  ;;  %v278_v24 = vshll.u32 %v2088_v12, 16  ;;  %v2121_v39 = vld [vmem:[%s2066_s22 + $0x24] sm:$0xff]   ;;  %v2192_v2 = vld [vmem:[%s2066_s22 + $0xc] sm:$0xff]  }
  0x15   : > { %v288_v21 = vrot.slane %v286_v16, 1  ;;  %v296_v25 = vrot.slane %v294_v18, 1  ;;  %v298_v29 = vshrl.u32 %v2085_v11, 16  ;;  %v302_v30 = vshll.u32 %v2097_v19, 16  ;;  %v485_v43 = vld [vmem:[%s2066_s22] sm:$0xe] }
  0x16   : > { %v267_v14 = vrot.slane %v265_v8, 1  ;;  %v276_v33 = vor.u32 %v274_v23, %v272_v15  ;;  %v280_v34 = vrot.slane %v278_v24, 1  ;;  %v282_v38 = vshrl.u32 %v2088_v12, 16  ;;  %v1994_v40 = vld [vmem:[%s2066_s22 + $0x2c] ss:$0 sps:$4 sm:$0x11]  }
  0x17   : > { %v292_v28 = vor.u32 %v290_v17, %v288_v21  ;;  %v300_v35 = vor.u32 %v298_v29, %v296_v25  ;;  %v304_v36 = vrot.slane %v302_v30, 1  ;;  %v652_v44 = vrot.slane %v2121_v39, 1  ;;  %v604_v61 = vld [vmem:[%s2066_s22 + $0x4] sm:$0xe]  ;;  %v2187_v62 = vld [vmem:[%s2066_s22 + $0x8] sm:$0xf] }
  0x18   : > { %v268_v20 = vor.u32 %v267_v14, %v263_v7  ;;  %v281_v37 = vsel %vm261_vm2, %v276_v33, %v280_v34  ;;  %v284_v42 = vor.u32 %v282_v38, %v280_v34  ;;  %v654_v45 = vrot.slane %v1994_v40, 1  ;;  %v2211_v18 = vld [vmem:[%s2066_s22 + $0x14] sm:$0xff]   ;;  %v1662_v24 = vld [vmem:[%s2472_s1 + $0xc] sm:$0x3]  ;;  %v2231_v30 = vld [vmem:[%s2066_s22 + $0x1c] sm:$0xff]  }
  0x19   : > { %v297_v32 = vsel %vm261_vm2, %v292_v28, %v296_v25  ;;  %v305_v41 = vsel %vm261_vm2, %v300_v35, %v304_v36  ;;  %v1630_v49 = vcombine.low %v485_v43, %v2070_v4  ;;  %v495_v56 = vrot.slane %v2088_v12, 1  ;;  %v2255_v48 = vld [vmem:[%s2066_s22 + $0x2c] ss:$0 sps:$4 sm:$0x33]   ;;  %v918_v53 = vld [vmem:[%s2066_s22 + $0x4] sm:$0xc] }
  0x1a   : > { %v273_v27 = vsel %vm261_vm2, %v268_v20, %v272_v15  ;;  %1784 = vmatmul.mubr.msk.bf16.vlgmr.msra.gmra.mrb[0].mxu1 %vm306_vm3, %v297_v32  ;;  %v2136_v46 = vsel %vm491_vm4, %v652_v44, %v654_v45  ;;  %v289_v47 = vsel %vm261_vm2, %v284_v42, %v288_v21  ;;  %v497_v58 = vrot.slane %v2082_v10, 1 }
  0x1b   : > { %1772 = vmatmul.mubr.msk.bf16.vlgmr.msra.gmra.mrb[0].mxu0 %vm306_vm3, %v273_v27  ;;  %1792 = vmatpush3.bf16.msra.mxu1 %v410_v31  ;;  %v492_v51 = vrot.slane %v1630_v49, 1  ;;  %v496_v57 = vsel %vm491_vm4, %v493_v52, %v495_v56  ;;  %v499_v60 = vrot.slane %v2085_v11, 1  ;;  %v1637_v0 = vcombine.low %v604_v61, %v2187_v62 }
  0x1c   : > { %1814 = vmatpush3.bf16.msra.mxu0 %v519_v26  ;;  %1775 = vmatprep.mubr.msk.bf16.mxu0 %vm2014_vm1, %v2013_v1  ;;  %v498_v59 = vsel %vm491_vm4, %v495_v56, %v497_v58  ;;  %v501_v3 = vrot.slane %v2097_v19, 1  ;;  %v776_v7 = vshll.u32 %v2192_v2, 16  ;;  %v646_v9 = vrot.slane %v2192_v2, 1 }
  0x1d   : > { %1857 = vmatprep.subr.bf16.mxu0 %v2013_v1  ;;  %1787 = vmatprep.mubr.msk.bf16.mxu1 %vm2014_vm1, %v2013_v1  ;;  %v494_v54 = vsel %vm491_vm4, %v492_v51, %v493_v52  ;;  %v500_v63 = vsel %vm491_vm4, %v497_v58, %v499_v60  ;;  %v765_v4 = vshrl.u32 %v1637_v0, 16  ;;  %v645_v8 = vrot.slane %v1637_v0, 1  ;;  %v1037_v58 = vld [vmem:[%s2066_s22 + $0x8] sm:$0xc] }
  0x1e   : > { %1835 = vmatprep.subr.bf16.mxu1 %v2013_v1  ;;  %v778_v16 = vrot.slane %v776_v7, 2  ;;  %v782_v21 = vshrl.u32 %v2211_v18, 16  ;;  %v785_v22 = vshll.u32 %v2211_v18, 16  ;;  %v648_v23 = vrot.slane %v2211_v18, 1  ;;  %v1681_v7 = vld [vmem:[%s2472_s1 + $0x10] sm:$0x3] }
  0x1f   : > { %v767_v13 = vrot.slane %v765_v4, 1  ;;  %v647_v17 = vsel %vm491_vm4, %v645_v8, %v646_v9  ;;  %v1105_v28 = vsel %vm322_vm0, %v1662_v24, 0  ;;  %v791_v32 = vshrl.u32 %v2231_v30, 16 }
  0x20   : > { %v784_v26 = vrot.slane %v782_v21, 1  ;;  %v787_v27 = vrot.slane %v785_v22, 2  ;;  %v649_v29 = vsel %vm491_vm4, %v646_v9, %v648_v23  ;;  %v794_v33 = vshll.u32 %v2231_v30, 16  ;;  %v2306_v9 = vld [vmem:[%s2066_s22 + $0x18] sm:$0xff]  }
  0x21   : > { %v650_v34 = vrot.slane %v2231_v30, 1  ;;  %v793_v36 = vrot.slane %v791_v32, 1  ;;  %v803_v42 = vshll.u32 %v2121_v39, 16  ;;  %v809_v51 = vshrl.u32 %v2255_v48, 16 }
  0x22   : > { %1788 = vmatmul.mubr.msk.bf16.gmra.mrb[4].mxu1 %vm306_vm3, %v305_v41  ;;  %v788_v31 = vor.u32 %v787_v27, %v784_v26  ;;  %v800_v41 = vshrl.u32 %v2121_v39, 16  ;;  %v812_v52 = vshll.u32 %v2255_v48, 16  ;;  %v1656_v56 = vcombine.low %v918_v53, %v2187_v62 }
  0x23   : > { %1776 = vmatmul.mubr.msk.bf16.gmra.mrb[4].mxu0 %vm306_vm3, %v281_v37  ;;  %1793 = vmatprep.mubr.msk.bf16.mxu1 %vm2014_vm1, %v2013_v1  ;;  %v796_v37 = vrot.slane %v794_v33, 2  ;;  %v651_v38 = vsel %vm491_vm4, %v648_v23, %v650_v34  ;;  %v653_v49 = vsel %vm491_vm4, %v650_v34, %v652_v44  ;;  %v926_v61 = vrot.slane %v2192_v2, 2 }
  0x24   : > { %1779 = vmatprep.mubr.msk.bf16.mxu0 %vm2014_vm1, %v2013_v1  ;;  %v802_v45 = vrot.slane %v800_v41, 1  ;;  %v934_v23 = vrot.slane %v2255_v48, 2 }
  0x25   : > { %v797_v40 = vor.u32 %v796_v37, %v793_v36 }
  0x27   : > { %v798_v43 = vsel %vm763_vm5, %v788_v31, %v797_v40 }
  0x2a   : > { %1794 = vmatmul.mubr.msk.bf16.vlgmr.msra.gmra.mrb[8].mxu1 %vm306_vm3, %v2073_v5  ;;  %v768_v5 = vshll.u32 %v1637_v0, 16 }
  0x2b   : > { %1780 = vmatmul.mubr.msk.bf16.gmra.mrb[8].mxu0 %vm306_vm3, %v289_v47  ;;  %1836 = vmatpush3.bf16.msra.mxu1 %v672_v50  ;;  %v805_v47 = vrot.slane %v803_v42, 2 }
  0x2c   : > { %1815 = vmatprep.mubr.msk.bf16.mxu0 %vm2014_vm1, %v2013_v1  ;;  %1797 = vmatprep.mubr.msk.bf16.mxu1 %vm2014_vm1, %v2013_v1  ;;  %v770_v14 = vrot.slane %v768_v5, 2 }
  0x2d   : > { %1879 = vmatprep.subr.bf16.mxu1 %v2013_v1  ;;  %v806_v50 = vor.u32 %v805_v47, %v802_v45 }
  0x2e   : > { %v771_v19 = vor.u32 %v770_v14, %v767_v13  ;;  %v1081_v13 = vrot.slane %v2306_v9, 2  ;;  %v930_v14 = vrot.slane %v2231_v30, 2 }
  0x2f   : > { %v807_v44 = vsel %vm763_vm5, %v797_v40, %v806_v50  ;;  %v1218_v40 = vshll.u32 %v2306_v9, 16 }
  0x31   : > { %v1220_v47 = vrot.slane %v1218_v40, 3 }
  0x32   : > { %1798 = vmatmul.mubr.msk.bf16.gmra.mrb[12].mxu1 %vm306_vm3, %v2076_v6  ;;  %v773_v6 = vshrl.u32 %v2192_v2, 16 }
  0x33   : > { %1816 = vmatmul.mubr.msk.bf16.vlgmr.msra.gmra.mrb[12].mxu0 %vm306_vm3, %v494_v54  ;;  %1801 = vmatprep.mubr.msk.bf16.mxu1 %vm2014_vm1, %v2013_v1  ;;  %v811_v54 = vrot.slane %v809_v51, 1 }
  0x34   : > { %1858 = vmatpush3.bf16.msra.mxu0 %v833_v55  ;;  %1819 = vmatprep.mubr.msk.bf16.mxu0 %vm2014_vm1, %v2013_v1  ;;  %v775_v15 = vrot.slane %v773_v6, 1  ;;  %v814_v55 = vrot.slane %v812_v52, 2  ;;  %v928_v6 = vrot.slane %v2211_v18, 2 }
  0x35   : > { %1901 = vmatprep.subr.bf16.mxu0 %v2013_v1 }
  0x36   : > { %v779_v20 = vor.u32 %v778_v16, %v775_v15  ;;  %v2320_v16 = vld [vmem:[%s2066_s22 + $0x20] sm:$0xff]  }
  0x37   : > { %v1083_v18 = vrot.slane %v2320_v16, 2  ;;  %v1224_v51 = vshrl.u32 %v2320_v16, 16  ;;  %v1227_v52 = vshll.u32 %v2320_v16, 16 }
  0x38   : > { %v780_v25 = vsel %vm763_vm5, %v771_v19, %v779_v20  ;;  %v789_v35 = vsel %vm763_vm5, %v779_v20, %v788_v31  ;;  %v2333_v20 = vld [vmem:[%s2066_s22 + $0x28] sm:$0xff]  }
  0x39   : > { %v1084_v19 = vsel %vm924_vm6, %v1081_v13, %v1083_v18  ;;  %v1085_v22 = vrot.slane %v2333_v20, 2 }
  0x3a   : > { %1802 = vmatmul.mubr.msk.bf16.gmra.mrb[16].mxu1 %vm306_vm3, %v2088_v12  ;;  %v1655_v12 = vld [vmem:[%s2472_s1 + $0xa] sm:$0x3] }
  0x3b   : > { %1820 = vmatmul.mubr.msk.bf16.gmra.mrb[16].mxu0 %vm306_vm3, %v496_v57  ;;  %1805 = vmatprep.mubr.msk.bf16.mxu1 %vm2014_vm1, %v2013_v1  ;;  %v815_v57 = vor.u32 %v814_v55, %v811_v54  ;;  %v1086_v27 = vsel %vm924_vm6, %v1083_v18, %v1085_v22  ;;  %v1226_v54 = vrot.slane %v1224_v51, 2  ;;  %v1229_v55 = vrot.slane %v1227_v52, 3 }
  0x3c   : > { %1823 = vmatprep.mubr.msk.bf16.mxu0 %vm2014_vm1, %v2013_v1 }
  0x3d   : > { %v816_v62 = vsel %vm763_vm5, %v806_v50, %v815_v57  ;;  %v1230_v57 = vor.u32 %v1229_v55, %v1226_v54 }
  0x42   : > { %1806 = vmatmul.mubr.msk.bf16.gmra.mrb[20].mxu1 %vm306_vm3, %v2082_v10  ;;  %v502_v10 = vsel %vm491_vm4, %v499_v60, %v501_v3  ;;  %v925_v60 = vrot.slane %v1656_v56, 2  ;;  %v1361_v56 = vrot.slane %v2306_v9, 3 }
  0x43   : > { %1824 = vmatmul.mubr.msk.bf16.gmra.mrb[20].mxu0 %vm306_vm3, %v498_v59  ;;  %1809 = vmatprep.mubr.msk.bf16.mxu1 %vm2014_vm1, %v2013_v1  ;;  %v2278_v59 = vld [vmem:[%s2066_s22 + $0xc] sm:$0xf] }
  0x44   : > { %1827 = vmatprep.mubr.msk.bf16.mxu0 %vm2014_vm1, %v2013_v1  ;;  %v1663_v0 = vcombine.low %v1037_v58, %v2278_v59  ;;  %v927_v3 = vsel %vm924_vm6, %v925_v60, %v926_v61  ;;  %v1233_v58 = vshrl.u32 %v2333_v20, 16 }
  0x46   : > { %v1078_v2 = vrot.slane %v1663_v0, 2  ;;  %v1201_v24 = vshll.u32 %v1663_v0, 16 }
  0x48   : > { %v1203_v31 = vrot.slane %v1201_v24, 3 }
  0x4a   : > { %1810 = vmatmul.mubr.msk.bf16.gmra.mrb[24].mxu1 %vm306_vm3, %v2085_v11  ;;  %v952_v11 = vsel %vm322_vm0, %v1655_v12, 0  ;;  %v929_v12 = vsel %vm924_vm6, %v926_v61, %v928_v6 }
  0x4b   : > { %1828 = vmatmul.mubr.msk.bf16.gmra.mrb[24].mxu0 %vm306_vm3, %v500_v63  ;;  %1837 = vmatprep.mubr.msk.bf16.mxu1 %vm2014_vm1, %v2013_v1  ;;  %v1674_v63 = vld [vmem:[%s2472_s1 + $0xe] sm:$0x3] }
  0x4c   : > { %1831 = vmatprep.mubr.msk.bf16.mxu0 %vm2014_vm1, %v2013_v1  ;;  %v1266_v4 = vsel %vm322_vm0, %v1674_v63, 0 }
  0x52   : > { %1838 = vmatmul.mubr.msk.bf16.vlgmr.msra.gmra.mrb[28].mxu1 %vm306_vm3, %v647_v17  ;;  %v931_v17 = vsel %vm924_vm6, %v928_v6, %v930_v14 }
  0x53   : > { %1832 = vmatmul.mubr.msk.bf16.gmra.mrb[28].mxu0 %vm306_vm3, %v502_v10  ;;  %1880 = vmatpush3.bf16.msra.mxu1 %v952_v11  ;;  %v1385_v10 = vsel %vm322_vm0, %v1681_v7, 0  ;;  %v932_v11 = vrot.slane %v2121_v39, 2  ;;  %v1198_v39 = vshrl.u32 %v1663_v0, 16  ;;  %v2004_v0 = vld [vmem:[%s2066_s22 + $0x30] ss:$0 sps:$4 sm:$0x77]  }
  0x54   : > { %1859 = vmatprep.mubr.msk.bf16.mxu0 %vm2014_vm1, %v2013_v1  ;;  %1841 = vmatprep.mubr.msk.bf16.mxu1 %vm2014_vm1, %v2013_v1 }
  0x55   : > { %1923 = vmatprep.subr.bf16.mxu1 %v2013_v1  ;;  %v933_v21 = vsel %vm924_vm6, %v930_v14, %v932_v11  ;;  %v1200_v30 = vrot.slane %v1198_v39, 2  ;;  %v1367_v14 = vrot.slane %v2004_v0, 3 }
  0x57   : > { %v1204_v36 = vor.u32 %v1203_v31, %v1200_v30 }
  0x5a   : > { %1842 = vmatmul.mubr.msk.bf16.gmra.mrb[32].mxu1 %vm306_vm3, %v649_v29  ;;  %v935_v29 = vsel %vm924_vm6, %v932_v11, %v934_v23 }
  0x5b   : > { %1860 = vmatmul.mubr.msk.bf16.vlgmr.msra.gmra.mrb[32].mxu0 %vm306_vm3, %v780_v25  ;;  %1845 = vmatprep.mubr.msk.bf16.mxu1 %vm2014_vm1, %v2013_v1 }
  0x5c   : > { %1902 = vmatpush3.bf16.msra.mxu0 %v1105_v28  ;;  %1863 = vmatprep.mubr.msk.bf16.mxu0 %vm2014_vm1, %v2013_v1  ;;  %v2002_v28 = vld [vmem:[%s2066_s22 + $0x30] ss:$0 sps:$4 sm:$0x33]  }
  0x5d   : > { %1945 = vmatprep.subr.bf16.mxu0 %v2013_v1  ;;  %v1087_v34 = vrot.slane %v2002_v28, 2 }
  0x5f   : > { %v1088_v41 = vsel %vm924_vm6, %v1085_v22, %v1087_v34 }
  0x62   : > { %1846 = vmatmul.mubr.msk.bf16.gmra.mrb[36].mxu1 %vm306_vm3, %v651_v38  ;;  %v1215_v38 = vshrl.u32 %v2306_v9, 16  ;;  %v1365_v9 = vrot.slane %v2333_v20, 3 }
  0x63   : > { %1864 = vmatmul.mubr.msk.bf16.gmra.mrb[36].mxu0 %vm306_vm3, %v789_v35  ;;  %1849 = vmatprep.mubr.msk.bf16.mxu1 %vm2014_vm1, %v2013_v1  ;;  %v1351_v35 = vld [vmem:[%s2066_s22 + $0x8] sm:$0x8] }
  0x64   : > { %1867 = vmatprep.mubr.msk.bf16.mxu0 %vm2014_vm1, %v2013_v1  ;;  %v1682_v42 = vcombine.low %v1351_v35, %v2278_v59  ;;  %v1217_v45 = vrot.slane %v1215_v38, 2  ;;  %v1236_v59 = vshll.u32 %v2333_v20, 16 }
  0x66   : > { %v1358_v48 = vrot.slane %v1682_v42, 3  ;;  %v1221_v50 = vor.u32 %v1220_v47, %v1217_v45  ;;  %v1238_v63 = vrot.slane %v1236_v59, 3 }
  0x68   : > { %v1231_v61 = vsel %vm1196_vm7, %v1221_v50, %v1230_v57 }
  0x6a   : > { %1850 = vmatmul.mubr.msk.bf16.gmra.mrb[40].mxu1 %vm306_vm3, %v653_v49 }
  0x6b   : > { %1868 = vmatmul.mubr.msk.bf16.gmra.mrb[40].mxu0 %vm306_vm3, %v798_v43  ;;  %1853 = vmatprep.mubr.msk.bf16.mxu1 %vm2014_vm1, %v2013_v1 }
  0x6c   : > { %1871 = vmatprep.mubr.msk.bf16.mxu0 %vm2014_vm1, %v2013_v1 }
  0x72   : > { %1854 = vmatmul.mubr.msk.bf16.gmra.mrb[44].mxu1 %vm306_vm3, %v2136_v46  ;;  %v2289_v46 = vld [vmem:[%s2066_s22 + $0x10] sm:$0xff]  }
  0x73   : > { %1872 = vmatmul.mubr.msk.bf16.gmra.mrb[44].mxu0 %vm306_vm3, %v807_v44  ;;  %1881 = vmatprep.mubr.msk.bf16.mxu1 %vm2014_vm1, %v2013_v1  ;;  %v1079_v5 = vrot.slane %v2289_v46, 2  ;;  %v1206_v25 = vshrl.u32 %v2289_v46, 16  ;;  %v1209_v26 = vshll.u32 %v2289_v46, 16  ;;  %v1359_v49 = vrot.slane %v2289_v46, 3 }
  0x74   : > { %1875 = vmatprep.mubr.msk.bf16.mxu0 %vm2014_vm1, %v2013_v1  ;;  %v1363_v46 = vrot.slane %v2320_v16, 3 }
  0x75   : > { %v1080_v8 = vsel %vm924_vm6, %v1078_v2, %v1079_v5  ;;  %v1082_v15 = vsel %vm924_vm6, %v1079_v5, %v1081_v13  ;;  %v1208_v32 = vrot.slane %v1206_v25, 2  ;;  %v1211_v33 = vrot.slane %v1209_v26, 3 }
  0x76   : > { %v1360_v53 = vsel %vm1357_vm8, %v1358_v48, %v1359_v49  ;;  %v1362_v60 = vsel %vm1357_vm8, %v1359_v49, %v1361_v56  ;;  %v1245_v2 = vshll.u32 %v2004_v0, 16  ;;  %v1364_v5 = vsel %vm1357_vm8, %v1361_v56, %v1363_v46 }
  0x77   : > { %v1212_v37 = vor.u32 %v1211_v33, %v1208_v32 }
  0x79   : > { %v1213_v43 = vsel %vm1196_vm7, %v1204_v36, %v1212_v37  ;;  %v1222_v44 = vsel %vm1196_vm7, %v1212_v37, %v1221_v50 }
  0x7a   : > { %1882 = vmatmul.mubr.msk.bf16.vlgmr.msra.gmra.mrb[48].mxu1 %vm306_vm3, %v927_v3 }
  0x7b   : > { %1876 = vmatmul.mubr.msk.bf16.gmra.mrb[48].mxu0 %vm306_vm3, %v816_v62  ;;  %1924 = vmatpush3.bf16.msra.mxu1 %v1266_v4  ;;  %v1235_v62 = vrot.slane %v1233_v58, 2  ;;  %v1242_v4 = vshrl.u32 %v2004_v0, 16 }
  0x7c   : > { %1903 = vmatprep.mubr.msk.bf16.mxu0 %vm2014_vm1, %v2013_v1  ;;  %1885 = vmatprep.mubr.msk.bf16.mxu1 %vm2014_vm1, %v2013_v1 }
  0x7d   : > { %v1239_v3 = vor.u32 %v1238_v63, %v1235_v62  ;;  %v1244_v7 = vrot.slane %v1242_v4, 2 }
  0x7f   : > { %v1240_v6 = vsel %vm1196_vm7, %v1230_v57, %v1239_v3 }
  0x82   : > { %1886 = vmatmul.mubr.msk.bf16.gmra.mrb[52].mxu1 %vm306_vm3, %v929_v12  ;;  %v1366_v12 = vsel %vm1357_vm8, %v1363_v46, %v1365_v9 }
  0x83   : > { %1904 = vmatmul.mubr.msk.bf16.vlgmr.msra.gmra.mrb[52].mxu0 %vm306_vm3, %v1080_v8  ;;  %1889 = vmatprep.mubr.msk.bf16.mxu1 %vm2014_vm1, %v2013_v1  ;;  %v1247_v8 = vrot.slane %v1245_v2, 3 }
  0x84   : > { %1946 = vmatpush3.bf16.msra.mxu0 %v1385_v10  ;;  %1907 = vmatprep.mubr.msk.bf16.mxu0 %vm2014_vm1, %v2013_v1 }
  0x85   : > { %v1248_v10 = vor.u32 %v1247_v8, %v1244_v7 }
  0x87   : > { %v1249_v13 = vsel %vm1196_vm7, %v1239_v3, %v1248_v10 }
  0x8a   : > { %1890 = vmatmul.mubr.msk.bf16.gmra.mrb[56].mxu1 %vm306_vm3, %v931_v17 }
  0x8b   : > { %1908 = vmatmul.mubr.msk.bf16.gmra.mrb[56].mxu0 %vm306_vm3, %v1082_v15  ;;  %1893 = vmatprep.mubr.msk.bf16.mxu1 %vm2014_vm1, %v2013_v1  ;;  %v1368_v15 = vsel %vm1357_vm8, %v1365_v9, %v1367_v14 }
  0x8c   : > { %1911 = vmatprep.mubr.msk.bf16.mxu0 %vm2014_vm1, %v2013_v1 }
  0x92   : > { %1894 = vmatmul.mubr.msk.bf16.gmra.mrb[60].mxu1 %vm306_vm3, %v933_v21 }
  0x93   : > { %1912 = vmatmul.mubr.msk.bf16.gmra.mrb[60].mxu0 %vm306_vm3, %v1084_v19  ;;  %1897 = vmatprep.mubr.msk.bf16.mxu1 %vm2014_vm1, %v2013_v1 }
  0x94   : > { %1915 = vmatprep.mubr.msk.bf16.mxu0 %vm2014_vm1, %v2013_v1 }
  0x9a   : > { %1898 = vmatmul.mubr.msk.bf16.gmra.mrb[64].mxu1 %vm306_vm3, %v935_v29 }
  0x9b   : > { %1916 = vmatmul.mubr.msk.bf16.gmra.mrb[64].mxu0 %vm306_vm3, %v1086_v27  ;;  %1925 = vmatprep.mubr.msk.bf16.mxu1 %vm2014_vm1, %v2013_v1 }
  0x9c   : > { %1919 = vmatprep.mubr.msk.bf16.mxu0 %vm2014_vm1, %v2013_v1 }
  0xa2   : > { %1926 = vmatmul.mubr.msk.bf16.vlgmr.msra.gmra.mrb[68].mxu1 %vm306_vm3, %v1213_v43 }
  0xa3   : > { %1920 = vmatmul.mubr.msk.bf16.gmra.mrb[68].mxu0 %vm306_vm3, %v1088_v41  ;;  %1929 = vmatprep.mubr.msk.bf16.mxu1 %vm2014_vm1, %v2013_v1 }
  0xa4   : > { %1947 = vmatprep.mubr.msk.bf16.mxu0 %vm2014_vm1, %v2013_v1 }
  0xaa   : > { %1930 = vmatmul.mubr.msk.bf16.gmra.mrb[72].mxu1 %vm306_vm3, %v1222_v44 }
  0xab   : > { %1948 = vmatmul.mubr.msk.bf16.vlgmr.msra.gmra.mrb[72].mxu0 %vm306_vm3, %v1360_v53  ;;  %1933 = vmatprep.mubr.msk.bf16.mxu1 %vm2014_vm1, %v2013_v1 }
  0xac   : > { %1951 = vmatprep.mubr.msk.bf16.mxu0 %vm2014_vm1, %v2013_v1 }
  0xb2   : > { %1934 = vmatmul.mubr.msk.bf16.gmra.mrb[76].mxu1 %vm306_vm3, %v1231_v61 }
  0xb3   : > { %1952 = vmatmul.mubr.msk.bf16.gmra.mrb[76].mxu0 %vm306_vm3, %v1362_v60  ;;  %1937 = vmatprep.mubr.msk.bf16.mxu1 %vm2014_vm1, %v2013_v1 }
  0xb4   : > { %1955 = vmatprep.mubr.msk.bf16.mxu0 %vm2014_vm1, %v2013_v1 }
  0xba   : > { %1938 = vmatmul.mubr.msk.bf16.gmra.mrb[80].mxu1 %vm306_vm3, %v1240_v6 }
  0xbb   : > { %1956 = vmatmul.mubr.msk.bf16.gmra.mrb[80].mxu0 %vm306_vm3, %v1364_v5  ;;  %1941 = vmatprep.mubr.msk.bf16.mxu1 %vm2014_vm1, %v2013_v1 }
  0xbc   : > { %1959 = vmatprep.mubr.msk.bf16.mxu0 %vm2014_vm1, %v2013_v1 }
  0xc2   : > { %1942 = vmatmul.mubr.msk.bf16.gmra.mrb[84].mxu1 %vm306_vm3, %v1249_v13 }
  0xc3   : > { %1960 = vmatmul.mubr.msk.bf16.gmra.mrb[84].mxu0 %vm306_vm3, %v1366_v12 }
  0xc4   : > { %1963 = vmatprep.mubr.msk.bf16.mxu0 %vm2014_vm1, %v2013_v1 }
  0xcb   : > { %1964 = vmatmul.mubr.msk.bf16.gmra.mrb[88].mxu0 %vm306_vm3, %v1368_v15 }
  0xed   : > { %v384_v11 = vpop.f32.mrb[0].mxu1 }
  0xee   : > { %v360_v16 = vpop.f32.mrb[0].mxu0  ;;  %v1785_v20 = vpop.f32.mrb[1].mxu1 }
  0xef   : > { %v1773_v17 = vpop.f32.mrb[1].mxu0  ;;  %v387_v21 = vpop.f32.mrb[2].mxu1 }
  0xf0   : > { %v363_v18 = vpop.f32.mrb[2].mxu0  ;;  %v1786_v22 = vpop.f32.mrb[3].mxu1 }
  0xf1   : > { %v1774_v19 = vpop.f32.mrb[3].mxu0 }
  0xf5   : > { %v392_v25 = vpop.f32.mrb[4].mxu1 }
  0xf6   : > { %v368_v23 = vpop.f32.mrb[4].mxu0  ;;  %v1789_v26 = vpop.f32.mrb[5].mxu1 }
  0xf7   : > { %v1777_v39 = vpop.f32.mrb[5].mxu0  ;;  %v395_v27 = vpop.f32.mrb[6].mxu1 }
  0xf8   : > { %v371_v24 = vpop.f32.mrb[6].mxu0  ;;  %v1790_v28 = vpop.f32.mrb[7].mxu1 }
  0xf9   : > { %v1778_v1 = vpop.f32.mrb[7].mxu0 }
  0xfd   : > { %v446_v31 = vpop.f32.mrb[8].mxu1 }
  0xfe   : > { %v376_v29 = vpop.f32.mrb[8].mxu0  ;;  %v447_v33 = vadd.f32 %v446_v31, %v360_v16  ;;  %v1795_v34 = vpop.f32.mrb[9].mxu1 }
  0xff   : > { %v1781_v30 = vpop.f32.mrb[9].mxu0  ;;  %v449_v36 = vpop.f32.mrb[10].mxu1 }
 0x100   : > { %v379_v32 = vpop.f32.mrb[10].mxu0  ;;  %v450_v37 = vadd.f32 %v449_v36, %v363_v18  ;;  %v1796_v38 = vpop.f32.mrb[11].mxu1 }
 0x101   : > { %v1782_v35 = vpop.f32.mrb[11].mxu0 }
 0x105   : > { %v454_v43 = vpop.f32.mrb[12].mxu1 }
 0x106   : > { %v555_v40 = vpop.f32.mrb[12].mxu0  ;;  %v455_v47 = vadd.f32 %v454_v43, %v368_v23  ;;  %v1799_v48 = vpop.f32.mrb[13].mxu1 }
 0x107   : > { %v594_v41 = vadd.f32 %v555_v40, %v447_v33  ;;  %v1817_v42 = vpop.f32.mrb[13].mxu0  ;;  %v457_v51 = vpop.f32.mrb[14].mxu1 }
 0x108   : > { %v558_v45 = vpop.f32.mrb[14].mxu0  ;;  %v458_v52 = vadd.f32 %v457_v51, %v371_v24  ;;  %v1800_v53 = vpop.f32.mrb[15].mxu1 }
 0x109   : > { %v595_v49 = vadd.f32 %v558_v45, %v450_v37  ;;  %v1818_v50 = vpop.f32.mrb[15].mxu0 }
 0x10d   : > { %v462_v56 = vpop.f32.mrb[16].mxu1 }
 0x10e   : > { %v563_v44 = vpop.f32.mrb[16].mxu0  ;;  %v463_v58 = vadd.f32 %v462_v56, %v376_v29  ;;  %v1803_v59 = vpop.f32.mrb[17].mxu1 }
 0x10f   : > { %v596_v54 = vadd.f32 %v563_v44, %v455_v47  ;;  %v1821_v55 = vpop.f32.mrb[17].mxu0  ;;  %v465_v62 = vpop.f32.mrb[18].mxu1 }
 0x110   : > { %v566_v57 = vpop.f32.mrb[18].mxu0  ;;  %v466_v63 = vadd.f32 %v465_v62, %v379_v32  ;;  %v1804_v0 = vpop.f32.mrb[19].mxu1 }
 0x111   : > { %v597_v60 = vadd.f32 %v566_v57, %v458_v52  ;;  %v1822_v61 = vpop.f32.mrb[19].mxu0 }
 0x115   : > { %v470_v2 = vpop.f32.mrb[20].mxu1 }
 0x116   : > { %v571_v46 = vpop.f32.mrb[20].mxu0  ;;  %v471_v6 = vadd.f32 %v470_v2, %v384_v11  ;;  %v1807_v7 = vpop.f32.mrb[21].mxu1 }
 0x117   : > { %v598_v3 = vadd.f32 %v571_v46, %v463_v58  ;;  %v1825_v4 = vpop.f32.mrb[21].mxu0  ;;  %v473_v10 = vpop.f32.mrb[22].mxu1 }
 0x118   : > { %v574_v5 = vpop.f32.mrb[22].mxu0  ;;  %v474_v12 = vadd.f32 %v473_v10, %v387_v21  ;;  %v1808_v13 = vpop.f32.mrb[23].mxu1 }
 0x119   : > { %v599_v8 = vadd.f32 %v574_v5, %v466_v63  ;;  %v1826_v9 = vpop.f32.mrb[23].mxu0 }
 0x11d   : > { %v478_v17 = vpop.f32.mrb[24].mxu1 }
 0x11e   : > { %v579_v14 = vpop.f32.mrb[24].mxu0  ;;  %v479_v19 = vadd.f32 %v478_v17, %v392_v25  ;;  %v1811_v20 = vpop.f32.mrb[25].mxu1 }
 0x11f   : > { %v600_v15 = vadd.f32 %v579_v14, %v471_v6  ;;  %v1829_v16 = vpop.f32.mrb[25].mxu0  ;;  %v481_v39 = vpop.f32.mrb[26].mxu1 }
 0x120   : > { %v582_v18 = vpop.f32.mrb[26].mxu0  ;;  %v482_v24 = vadd.f32 %v481_v39, %v395_v27  ;;  %v1812_v1 = vpop.f32.mrb[27].mxu1 }
 0x121   : > { %v601_v22 = vadd.f32 %v582_v18, %v474_v12  ;;  %v1830_v23 = vpop.f32.mrb[27].mxu0 }
 0x125   : > { %v708_v29 = vpop.f32.mrb[28].mxu1 }
 0x126   : > { %v587_v26 = vpop.f32.mrb[28].mxu0  ;;  %v747_v31 = vadd.f32 %v708_v29, %v594_v41  ;;  %v1839_v21 = vpop.f32.mrb[29].mxu1 }
 0x127   : > { %v602_v11 = vadd.f32 %v587_v26, %v479_v19  ;;  %v1833_v28 = vpop.f32.mrb[29].mxu0  ;;  %v711_v34 = vpop.f32.mrb[30].mxu1 }
 0x128   : > { %v590_v30 = vpop.f32.mrb[30].mxu0  ;;  %v748_v35 = vadd.f32 %v711_v34, %v595_v49  ;;  %v1840_v36 = vpop.f32.mrb[31].mxu1 }
 0x129   : > { %v603_v32 = vadd.f32 %v590_v30, %v482_v24  ;;  %v1834_v33 = vpop.f32.mrb[31].mxu0 }
 0x12d   : > { %v716_v40 = vpop.f32.mrb[32].mxu1 }
 0x12e   : > { %v869_v37 = vpop.f32.mrb[32].mxu0  ;;  %v749_v43 = vadd.f32 %v716_v40, %v596_v54  ;;  %v1843_v27 = vpop.f32.mrb[33].mxu1 }
 0x12f   : > { %v908_v25 = vadd.f32 %v869_v37, %v747_v31  ;;  %v1861_v38 = vpop.f32.mrb[33].mxu0  ;;  %v719_v48 = vpop.f32.mrb[34].mxu1 }
 0x130   : > { %v872_v42 = vpop.f32.mrb[34].mxu0  ;;  %v750_v50 = vadd.f32 %v719_v48, %v597_v60  ;;  %v1844_v51 = vpop.f32.mrb[35].mxu1 }
 0x131   : > { %v909_v45 = vadd.f32 %v872_v42, %v748_v35  ;;  %v1862_v47 = vpop.f32.mrb[35].mxu0 }
 0x135   : > { %v724_v44 = vpop.f32.mrb[36].mxu1 }
 0x136   : > { %v877_v52 = vpop.f32.mrb[36].mxu0  ;;  %v751_v56 = vadd.f32 %v724_v44, %v598_v3  ;;  %v1847_v49 = vpop.f32.mrb[37].mxu1 }
 0x137   : > { %v910_v41 = vadd.f32 %v877_v52, %v749_v43  ;;  %v1865_v53 = vpop.f32.mrb[37].mxu0  ;;  %v727_v59 = vpop.f32.mrb[38].mxu1 }
 0x138   : > { %v880_v55 = vpop.f32.mrb[38].mxu0  ;;  %v752_v61 = vadd.f32 %v727_v59, %v599_v8  ;;  %v1848_v62 = vpop.f32.mrb[39].mxu1 }
 0x139   : > { %v911_v57 = vadd.f32 %v880_v55, %v750_v50  ;;  %v1866_v58 = vpop.f32.mrb[39].mxu0 }
 0x13d   : > { %v732_v46 = vpop.f32.mrb[40].mxu1 }
 0x13e   : > { %v885_v63 = vpop.f32.mrb[40].mxu0  ;;  %v753_v2 = vadd.f32 %v732_v46, %v600_v15  ;;  %v1851_v60 = vpop.f32.mrb[41].mxu1 }
 0x13f   : > { %v912_v54 = vadd.f32 %v885_v63, %v751_v56  ;;  %v1869_v0 = vpop.f32.mrb[41].mxu0  ;;  %v735_v7 = vpop.f32.mrb[42].mxu1 }
 0x140   : > { %v888_v4 = vpop.f32.mrb[42].mxu0  ;;  %v754_v9 = vadd.f32 %v735_v7, %v601_v22  ;;  %v1852_v10 = vpop.f32.mrb[43].mxu1 }
 0x141   : > { %v913_v5 = vadd.f32 %v888_v4, %v752_v61  ;;  %v1870_v6 = vpop.f32.mrb[43].mxu0 }
 0x145   : > { %v740_v14 = vpop.f32.mrb[44].mxu1 }
 0x146   : > { %v893_v12 = vpop.f32.mrb[44].mxu0  ;;  %v755_v17 = vadd.f32 %v740_v14, %v602_v11  ;;  %v1855_v8 = vpop.f32.mrb[45].mxu1 }
 0x147   : > { %v914_v3 = vadd.f32 %v893_v12, %v753_v2  ;;  %v1873_v13 = vpop.f32.mrb[45].mxu0  ;;  %v743_v20 = vpop.f32.mrb[46].mxu1 }
 0x148   : > { %v896_v16 = vpop.f32.mrb[46].mxu0  ;;  %v756_v23 = vadd.f32 %v743_v20, %v603_v32  ;;  %v1856_v39 = vpop.f32.mrb[47].mxu1 }
 0x149   : > { %v915_v18 = vadd.f32 %v896_v16, %v754_v9  ;;  %v1874_v19 = vpop.f32.mrb[47].mxu0 }
 0x14d   : > { %v988_v26 = vpop.f32.mrb[48].mxu1 }
 0x14e   : > { %v901_v24 = vpop.f32.mrb[48].mxu0  ;;  %v1027_v29 = vadd.f32 %v988_v26, %v908_v25  ;;  %v1883_v22 = vpop.f32.mrb[49].mxu1 }
 0x14f   : > { %v916_v15 = vadd.f32 %v901_v24, %v755_v17  ;;  %v1877_v1 = vpop.f32.mrb[49].mxu0  ;;  %v991_v21 = vpop.f32.mrb[50].mxu1 }
 0x150   : > { %v904_v28 = vpop.f32.mrb[50].mxu0  ;;  %v1028_v33 = vadd.f32 %v991_v21, %v909_v45  ;;  %v1884_v34 = vpop.f32.mrb[51].mxu1 }
 0x151   : > { %v917_v30 = vadd.f32 %v904_v28, %v756_v23  ;;  %v1878_v31 = vpop.f32.mrb[51].mxu0 }
 0x152   : > { %v1692_v31 = vld [vmem:[%s2424_s18] sm:$0xff]  }
 0x155   : > { %v996_v37 = vpop.f32.mrb[52].mxu1 }
 0x156   : > { %v1141_v35 = vpop.f32.mrb[52].mxu0  ;;  %v1029_v40 = vadd.f32 %v996_v37, %v910_v41  ;;  %v1887_v32 = vpop.f32.mrb[53].mxu1 }
 0x157   : > { %v1180_v11 = vadd.f32 %v1141_v35, %v1027_v29  ;;  %v1905_v36 = vpop.f32.mrb[53].mxu0  ;;  %v999_v27 = vpop.f32.mrb[54].mxu1  ;;  %v1693_v35 = vunpack.c.l.bf16 %v1692_v31 }
 0x158   : > { %v1144_v38 = vpop.f32.mrb[54].mxu0  ;;  %v1030_v47 = vadd.f32 %v999_v27, %v911_v57  ;;  %v1888_v48 = vpop.f32.mrb[55].mxu1 }
 0x159   : > { %v1181_v42 = vadd.f32 %v1144_v38, %v1028_v33  ;;  %v1906_v43 = vpop.f32.mrb[55].mxu0  ;;  %v2430_v33 = vld [vmem:[%s2473_s2] ss:$0 sm:$0xff] }
 0x15a   : > { %v1694_v43 = vunpack.c.h.bf16 %v1692_v31 }
 0x15d   : > { %v1004_v52 = vpop.f32.mrb[56].mxu1 }
 0x15e   : > { %v1149_v50 = vpop.f32.mrb[56].mxu0  ;;  %v1031_v44 = vadd.f32 %v1004_v52, %v912_v54  ;;  %v1891_v45 = vpop.f32.mrb[57].mxu1 }
 0x15f   : > { %v1182_v25 = vadd.f32 %v1149_v50, %v1029_v40  ;;  %v1909_v51 = vpop.f32.mrb[57].mxu0  ;;  %v1007_v49 = vpop.f32.mrb[58].mxu1 }
 0x160   : > { %v1152_v53 = vpop.f32.mrb[58].mxu0  ;;  %v1032_v58 = vadd.f32 %v1007_v49, %v913_v5  ;;  %v1892_v59 = vpop.f32.mrb[59].mxu1 }
 0x161   : > { %v1183_v55 = vadd.f32 %v1152_v53, %v1030_v47  ;;  %v1910_v56 = vpop.f32.mrb[59].mxu0 }
 0x165   : > { %v1012_v63 = vpop.f32.mrb[60].mxu1 }
 0x166   : > { %v1157_v61 = vpop.f32.mrb[60].mxu0  ;;  %v1033_v57 = vadd.f32 %v1012_v63, %v914_v3  ;;  %v1895_v46 = vpop.f32.mrb[61].mxu1 }
 0x167   : > { %v2408_v41 = vadd.f32 %v1157_v61, %v1031_v44  ;;  %v1913_v62 = vpop.f32.mrb[61].mxu0  ;;  %v1015_v60 = vpop.f32.mrb[62].mxu1 }
 0x168   : > { %v1160_v0 = vpop.f32.mrb[62].mxu0  ;;  %v1034_v54 = vadd.f32 %v1015_v60, %v915_v18  ;;  %v1896_v6 = vpop.f32.mrb[63].mxu1 }
 0x169   : > { %v2410_v4 = vadd.f32 %v1160_v0, %v1032_v58  ;;  %v1914_v2 = vpop.f32.mrb[63].mxu0 }
 0x16d   : > { %v1020_v10 = vpop.f32.mrb[64].mxu1 }
 0x16e   : > { %v1165_v7 = vpop.f32.mrb[64].mxu0  ;;  %v1035_v13 = vadd.f32 %v1020_v10, %v916_v15  ;;  %v1899_v14 = vpop.f32.mrb[65].mxu1  ;;  %v1712_v10 = vld [vmem:[%s2424_s18 + $0x10] sm:$0xff]  }
 0x16f   : > { %v2412_v9 = vadd.f32 %v1165_v7, %v1033_v57  ;;  %v1917_v5 = vpop.f32.mrb[65].mxu0  ;;  %v1023_v3 = vpop.f32.mrb[66].mxu1 }
 0x170   : > { %v1168_v12 = vpop.f32.mrb[66].mxu0  ;;  %v1036_v8 = vadd.f32 %v1023_v3, %v917_v30  ;;  %v1900_v19 = vpop.f32.mrb[67].mxu1  ;;  %v1701_v3 = vunpack.c.l.bf16 %v1712_v10 }
 0x171   : > { %v2414_v16 = vadd.f32 %v1168_v12, %v1034_v54  ;;  %v1918_v17 = vpop.f32.mrb[67].mxu0 }
 0x175   : > { %v1302_v39 = vpop.f32.mrb[68].mxu1 }
 0x176   : > { %v1173_v20 = vpop.f32.mrb[68].mxu0  ;;  %v1341_v1 = vadd.f32 %v1302_v39, %v1180_v11  ;;  %v1927_v26 = vpop.f32.mrb[69].mxu1 }
 0x177   : > { %v2417_v23 = vadd.f32 %v1173_v20, %v1035_v13  ;;  %v1921_v18 = vpop.f32.mrb[69].mxu0  ;;  %v1305_v29 = vpop.f32.mrb[70].mxu1 }
 0x178   : > { %v1176_v24 = vpop.f32.mrb[70].mxu0  ;;  %v1342_v22 = vadd.f32 %v1305_v29, %v1181_v42  ;;  %v1928_v30 = vpop.f32.mrb[71].mxu1 }
 0x179   : > { %v2419_v28 = vadd.f32 %v1176_v24, %v1036_v8  ;;  %v1922_v15 = vpop.f32.mrb[71].mxu0 }
 0x17d   : > { %v1310_v36 = vpop.f32.mrb[72].mxu1 }
 0x17e   : > { %v1421_v21 = vpop.f32.mrb[72].mxu0  ;;  %v1343_v38 = vadd.f32 %v1310_v36, %v1182_v25  ;;  %v1931_v32 = vpop.f32.mrb[73].mxu1  ;;  %v1711_v25 = vld [vmem:[%s2424_s18 + $0x8] sm:$0xff]  }
 0x17f   : > { %v1460_v34 = vadd.f32 %v1421_v21, %v1341_v1  ;;  %v1949_v11 = vpop.f32.mrb[73].mxu0  ;;  %v1313_v47 = vpop.f32.mrb[74].mxu1  ;;  %v1697_v58 = vunpack.c.l.bf16 %v1711_v25  ;;  %v1698_v46 = vunpack.c.h.bf16 %v1711_v25  ;;  %v1702_v1 = vunpack.c.h.bf16 %v1712_v10  ;;  %v1713_v21 = vld [vmem:[%s2424_s18 + $0x18] sm:$0xff]  }
 0x180   : > { %v1424_v37 = vpop.f32.mrb[74].mxu0  ;;  %v1344_v50 = vadd.f32 %v1313_v47, %v1183_v55  ;;  %v1932_v52 = vpop.f32.mrb[75].mxu1  ;;  %v1706_v47 = vunpack.c.h.bf16 %v1713_v21 }
 0x181   : > { %v1477_v40 = vadd.f32 %v2430_v33, %v1460_v34  ;;  %v1461_v42 = vadd.f32 %v1424_v37, %v1342_v22  ;;  %v1950_v27 = vpop.f32.mrb[75].mxu0  ;;  %v1705_v37 = vunpack.c.l.bf16 %v1713_v21 }
 0x183   : > { %v1507_v48 = vadd.f32 %v1693_v35, %v1477_v40  ;;  %v1478_v51 = vadd.f32 %v2430_v33, %v1461_v42 }
 0x185   : > { %v1517_v53 = vmax.f32 %v1507_v48, 0.0  ;;  %v1508_v44 = vadd.f32 %v1694_v43, %v1478_v51  ;;  %v1318_v59 = vpop.f32.mrb[76].mxu1 }
 0x186   : > { %v1429_v45 = vpop.f32.mrb[76].mxu0  ;;  %v1345_v62 = vadd.f32 %v1318_v59, %v2408_v41  ;;  %v1935_v0 = vpop.f32.mrb[77].mxu1 }
 0x187   : > { %1527 = vst [vmem:[%s2438_s24] sm:$0xff] %v1517_v53  ;;  %v1518_v56 = vmax.f32 %v1508_v44, 0.0  ;;  %v1462_v49 = vadd.f32 %v1429_v45, %v1343_v38  ;;  %v1953_v55 = vpop.f32.mrb[77].mxu0  ;;  %v1321_v60 = vpop.f32.mrb[78].mxu1  ;;  %v1714_v44 = vld [vmem:[%s2424_s18 + $0x20] sm:$0xff]  }
 0x188   : > { %v1432_v61 = vpop.f32.mrb[78].mxu0  ;;  %v1346_v6 = vadd.f32 %v1321_v60, %v2410_v4  ;;  %v1936_v5 = vpop.f32.mrb[79].mxu1  ;;  %v1709_v55 = vunpack.c.l.bf16 %v1714_v44 }
 0x189   : > { %1528 = vst [vmem:[%s2438_s24 + $0x8] sm:$0xff] %v1518_v56  ;;  %v1479_v63 = vadd.f32 %v2430_v33, %v1462_v49  ;;  %v1463_v57 = vadd.f32 %v1432_v61, %v1344_v50  ;;  %v1954_v2 = vpop.f32.mrb[79].mxu0 }
 0x18b   : > { %v1509_v54 = vadd.f32 %v1697_v58, %v1479_v63  ;;  %v1480_v7 = vadd.f32 %v2430_v33, %v1463_v57 }
 0x18d   : > { %v1519_v12 = vmax.f32 %v1509_v54, 0.0  ;;  %v1510_v13 = vadd.f32 %v1698_v46, %v1480_v7  ;;  %v1326_v19 = vpop.f32.mrb[80].mxu1 }
 0x18e   : > { %v1437_v14 = vpop.f32.mrb[80].mxu0  ;;  %v1347_v18 = vadd.f32 %v1326_v19, %v2412_v9  ;;  %v1939_v39 = vpop.f32.mrb[81].mxu1 }
 0x18f   : > { %1529 = vst [vmem:[%s2438_s24 + $0x10] sm:$0xff] %v1519_v12  ;;  %v1520_v41 = vmax.f32 %v1510_v13, 0.0  ;;  %v1464_v17 = vadd.f32 %v1437_v14, %v1345_v62  ;;  %v1957_v8 = vpop.f32.mrb[81].mxu0  ;;  %v1329_v15 = vpop.f32.mrb[82].mxu1 }
 0x190   : > { %v1440_v20 = vpop.f32.mrb[82].mxu0  ;;  %v1348_v22 = vadd.f32 %v1329_v15, %v2414_v16  ;;  %v1940_v31 = vpop.f32.mrb[83].mxu1 }
 0x191   : > { %1530 = vst [vmem:[%s2438_s24 + $0x18] sm:$0xff] %v1520_v41  ;;  %v1481_v4 = vadd.f32 %v2430_v33, %v1464_v17  ;;  %v1465_v24 = vadd.f32 %v1440_v20, %v1346_v6  ;;  %v1958_v26 = vpop.f32.mrb[83].mxu0 }
 0x193   : > { %v1511_v29 = vadd.f32 %v1701_v3, %v1481_v4  ;;  %v1482_v30 = vadd.f32 %v2430_v33, %v1465_v24 }
 0x195   : > { %v1521_v34 = vmax.f32 %v1511_v29, 0.0  ;;  %v1512_v35 = vadd.f32 %v1702_v1, %v1482_v30  ;;  %v1334_v40 = vpop.f32.mrb[84].mxu1 }
 0x196   : > { %v1445_v11 = vpop.f32.mrb[84].mxu0  ;;  %v1349_v42 = vadd.f32 %v1334_v40, %v2417_v23  ;;  %v1943_v43 = vpop.f32.mrb[85].mxu1 }
 0x197   : > { %1531 = vst [vmem:[%s2438_s24 + $0x20] sm:$0xff] %v1521_v34  ;;  %v1522_v9 = vmax.f32 %v1512_v35, 0.0  ;;  %v1466_v36 = vadd.f32 %v1445_v11, %v1347_v18  ;;  %v1961_v38 = vpop.f32.mrb[85].mxu0  ;;  %v1337_v50 = vpop.f32.mrb[86].mxu1 }
 0x198   : > { %v1448_v32 = vpop.f32.mrb[86].mxu0  ;;  %v1350_v52 = vadd.f32 %v1337_v50, %v2419_v28  ;;  %v1944_v53 = vpop.f32.mrb[87].mxu1  ;;  %v1710_v28 = vunpack.c.h.bf16 %v1714_v44 }
 0x199   : > { %1532 = vst [vmem:[%s2438_s24 + $0x28] sm:$0xff] %v1522_v9  ;;  %v1483_v16 = vadd.f32 %v2430_v33, %v1466_v36  ;;  %v1467_v27 = vadd.f32 %v1448_v32, %v1348_v22  ;;  %v1962_v48 = vpop.f32.mrb[87].mxu0 }
 0x19b   : > { %v1513_v51 = vadd.f32 %v1705_v37, %v1483_v16  ;;  %v1484_v25 = vadd.f32 %v2430_v33, %v1467_v27 }
 0x19d   : > { %v1523_v45 = vmax.f32 %v1513_v51, 0.0  ;;  %v1514_v56 = vadd.f32 %v1706_v47, %v1484_v25 }
 0x19e   : > { %v1453_v49 = vpop.f32.mrb[88].mxu0 }
 0x19f   : > { %1533 = vst [vmem:[%s2438_s24 + $0x30] sm:$0xff] %v1523_v45  ;;  %v1524_v23 = vmax.f32 %v1514_v56, 0.0  ;;  %v1468_v58 = vadd.f32 %v1453_v49, %v1349_v42  ;;  %v1965_v59 = vpop.f32.mrb[89].mxu0 }
 0x1a0   : > { %v1456_v61 = vpop.f32.mrb[90].mxu0 }
 0x1a1   : > { %1534 = vst [vmem:[%s2438_s24 + $0x38] sm:$0xff] %v1524_v23  ;;  %v1485_v62 = vadd.f32 %v2430_v33, %v1468_v58  ;;  %v1469_v63 = vadd.f32 %v1456_v61, %v1350_v52  ;;  %v1966_v0 = vpop.f32.mrb[91].mxu0 }
 0x1a3   : > { %v1515_v57 = vadd.f32 %v1709_v55, %v1485_v62  ;;  %v1486_v46 = vadd.f32 %v2430_v33, %v1469_v63 }
 0x1a5   : > { %v1525_v2 = vmax.f32 %v1515_v57, 0.0  ;;  %v1516_v60 = vadd.f32 %v1710_v28, %v1486_v46 }
 0x1a7   : > { %1535 = vst [vmem:[%s2438_s24 + $0x40] sm:$0xff] %v1525_v2  ;;  %v1526_v54 = vmax.f32 %v1516_v60, 0.0 }
 0x1a9   : > { %1536 = vst [vmem:[%s2438_s24 + $0x48] sm:$0xff] %v1526_v54 }
 0x1aa PF: > { %s14_s15 = sadd.s32 1, %s2011_s15  }
 0x1ab   : > { %p11_p4 = scmp.ge.s32.totalorder %s14_s15, 8  }
 0x1ad   :  { %13 = sbr.rel (!%p11_p4) target bundleno = 1 (0x1), region = 77 }

</bundles_post_ra>
